<compile_context>
chip_gen: v7x
topology: tpu7x:2x2x1
jax: 0.10.0
libtpu: 0.0.40
codegen_flags: <defaults>
</compile_context>

<pallas_src>
import jax
import jax.numpy as jnp
from jax.experimental import pallas as pl
from jax.experimental.pallas import tpu as pltpu  # noqa: F401  (TPU backend namespace)


# ----------------------------------------------------------------------------
# Kernel: whole forward in one invocation. All refs are full arrays in VMEM.
# ----------------------------------------------------------------------------
def _generator_kernel(
    state_ref,    # (T*B, state_dim)        time-major rows: row = t*B + b
    img_ref,      # (T*B, img_flat_dim)
    lang_ref,     # (B, t5_dim)
    wix_ref,      # (img_flat_dim, hidden)  image_fc weight (image part)
    wil_ref,      # (t5_dim, hidden)        image_fc weight (lang part)
    bi_ref,       # (1, hidden)
    wsx_ref,      # (state_dim, hidden)     state_fc weight (state part)
    wsl_ref,      # (t5_dim, hidden)        state_fc weight (lang part)
    bs_ref,       # (1, hidden)
    wih_st_ref,   # (hidden, 4*lstm_h)      LSTM input->gates, state-feature half
    wih_img_ref,  # (hidden, 4*lstm_h)      LSTM input->gates, image-feature half
    bl_ref,       # (1, 4*lstm_h)           b_ih + b_hh
    whh_ref,      # (4, lstm_h, lstm_h)     hidden->gate weights, per gate (i,f,g,o)
    wa1_ref,      # (lstm_h, hidden)
    ba1_ref,      # (1, hidden)
    wa2_ref,      # (hidden, out_pad)       zero-padded to lane-dense width
    ba2_ref,      # (1, out_pad)
    out_ref,      # (B, out_pad)
):
    TB = state_ref.shape[0]
    B = lang_ref.shape[0]
    T = TB // B
    H = whh_ref.shape[-1]          # lstm hidden size

    lang = lang_ref[...]

    # ---- loop-invariant language projections (computed once) -----------------
    lang_img = (
        jnp.dot(lang, wil_ref[...], preferred_element_type=jnp.float32) + bi_ref[...]
    )  # (B, hidden)
    lang_st = (
        jnp.dot(lang, wsl_ref[...], preferred_element_type=jnp.float32) + bs_ref[...]
    )  # (B, hidden)

    # Broadcast the per-batch language bias over the T*B rows (row = t*B + b).
    lang_img_rows = jnp.concatenate([lang_img] * T, axis=0)   # (T*B, hidden)
    lang_st_rows = jnp.concatenate([lang_st] * T, axis=0)     # (T*B, hidden)

    # ---- batched feature FCs over ALL timesteps (T*B rows on the MXU) --------
    img_feat = jnp.maximum(
        jnp.dot(img_ref[...], wix_ref[...], preferred_element_type=jnp.float32)
        + lang_img_rows,
        0.0,
    )  # (T*B, hidden)
    st_feat = jnp.maximum(
        jnp.dot(state_ref[...], wsx_ref[...], preferred_element_type=jnp.float32)
        + lang_st_rows,
        0.0,
    )  # (T*B, hidden)

    # ---- batched input->gate projection (concat emulated via split weights) --
    gates_x = (
        jnp.dot(st_feat, wih_st_ref[...], preferred_element_type=jnp.float32)
        + jnp.dot(img_feat, wih_img_ref[...], preferred_element_type=jnp.float32)
        + bl_ref[...]
    )  # (T*B, 4*H), PyTorch gate order: i, f, g, o

    # One-time per-gate column split (outside the recurrence).
    gx = [gates_x[:, k * H:(k + 1) * H] for k in range(4)]    # each (T*B, H)
    whh = [whh_ref[k] for k in range(4)]                      # each (H, H)

    # ---- LSTM recurrence: minimal serial chain per step -----------------------
    h = jnp.zeros((B, H), jnp.float32)
    c = jnp.zeros((B, H), jnp.float32)
    for t in range(T):  # trace-time unroll (T is small & static)
        r0, r1 = t * B, (t + 1) * B
        i_g = jax.nn.sigmoid(
            gx[0][r0:r1] + jnp.dot(h, whh[0], preferred_element_type=jnp.float32))
        f_g = jax.nn.sigmoid(
            gx[1][r0:r1] + jnp.dot(h, whh[1], preferred_element_type=jnp.float32))
        g_g = jnp.tanh(
            gx[2][r0:r1] + jnp.dot(h, whh[2], preferred_element_type=jnp.float32))
        o_g = jax.nn.sigmoid(
            gx[3][r0:r1] + jnp.dot(h, whh[3], preferred_element_type=jnp.float32))
        c = f_g * c + i_g * g_g
        h = o_g * jnp.tanh(c)

    # ---- action head on the last LSTM output (runs once) ----------------------
    a1 = jnp.maximum(
        jnp.dot(h, wa1_ref[...], preferred_element_type=jnp.float32) + ba1_ref[...],
        0.0,
    )
    out_ref[...] = (
        jnp.dot(a1, wa2_ref[...], preferred_element_type=jnp.float32) + ba2_ref[...]
    ).astype(out_ref.dtype)


# ----------------------------------------------------------------------------
# Wrapper: layout plumbing (flatten images, time-major rows, weight splitting,
# lane-dense output padding) is done in plain XLA outside the kernel.
# ----------------------------------------------------------------------------
def generator_forward(params, state_seq, image_seq, lang_emb):
    """state_seq: (B, T, state_dim); image_seq: (B, T, C, H, W); lang_emb: (B, t5_dim)."""
    B, T, state_dim = state_seq.shape
    _, _, C, Hh, Ww = image_seq.shape
    img_flat_dim = C * Hh * Ww

    # Per-timestep image flatten (== torch .view(B, -1)), time-major, merge (T, B).
    img_all = jnp.transpose(
        image_seq.reshape(B, T, img_flat_dim), (1, 0, 2)
    ).reshape(T * B, img_flat_dim)
    st_all = jnp.transpose(state_seq, (1, 0, 2)).reshape(T * B, state_dim)

    hidden = params["w_img_x"].shape[1]
    action_dim = params["w_a2"].shape[1]

    # Split the LSTM input weights into state/image halves (replaces the concat).
    w_ih_st = params["w_ih"][:hidden]       # (hidden, 4*lstm_h)
    w_ih_img = params["w_ih"][hidden:]      # (hidden, 4*lstm_h)
    # Per-gate hidden->hidden weights, stacked: (4, lstm_h, lstm_h), order i,f,g,o.
    w_hh_g = jnp.stack(jnp.split(params["w_hh"], 4, axis=1), axis=0)

    # Pad the action head to a lane-dense (multiple of 128) output width.
    out_pad = 128 * pl.cdiv(action_dim, 128)
    w_a2p = jnp.zeros((hidden, out_pad), jnp.float32).at[:, :action_dim].set(
        params["w_a2"])
    b_a2p = jnp.zeros((1, out_pad), jnp.float32).at[:, :action_dim].set(
        params["b_a2"])

    out_padded = pl.pallas_call(
        _generator_kernel,
        out_shape=jax.ShapeDtypeStruct((B, out_pad), jnp.float32),
    )(
        st_all, img_all, lang_emb,
        params["w_img_x"], params["w_img_l"], params["b_img"],
        params["w_st_x"], params["w_st_l"], params["b_st"],
        w_ih_st, w_ih_img, params["b_lstm"],
        w_hh_g,
        params["w_a1"], params["b_a1"], w_a2p, b_a2p,
    )
    return out_padded[:, :action_dim]


# ----------------------------------------------------------------------------
# Pure-JAX reference (mirrors the PyTorch forward) for a correctness check.
# ----------------------------------------------------------------------------
def generator_reference(params, state_seq, image_seq, lang_emb):
    B, T, _ = state_seq.shape
    img_flat = image_seq.reshape(B, T, -1)
    lstm_h = params["w_hh"].shape[0]
    h = jnp.zeros((B, lstm_h), jnp.float32)
    c = jnp.zeros((B, lstm_h), jnp.float32)
    for t in range(T):
        img_feat = jax.nn.relu(
            img_flat[:, t] @ params["w_img_x"] + lang_emb @ params["w_img_l"]
            + params["b_img"]
        )
        st_feat = jax.nn.relu(
            state_seq[:, t] @ params["w_st_x"] + lang_emb @ params["w_st_l"]
            + params["b_st"]
        )
        combined = jnp.concatenate([st_feat, img_feat], axis=-1)
        gates = combined @ params["w_ih"] + h @ params["w_hh"] + params["b_lstm"]
        i_g, f_g, g_g, o_g = jnp.split(gates, 4, axis=-1)
        c = jax.nn.sigmoid(f_g) * c + jax.nn.sigmoid(i_g) * jnp.tanh(g_g)
        h = jax.nn.sigmoid(o_g) * jnp.tanh(c)
    a1 = jax.nn.relu(h @ params["w_a1"] + params["b_a1"])
    return a1 @ params["w_a2"] + params["b_a2"]


def init_params(key, *, state_dim, img_flat_dim, t5_dim, hidden, lstm_h, action_dim):
    ks = jax.random.split(key, 16)
    s = 0.05
    return {
        "w_img_x": s * jax.random.normal(ks[0], (img_flat_dim, hidden), jnp.float32),
        "w_img_l": s * jax.random.normal(ks[1], (t5_dim, hidden), jnp.float32),
        "b_img":   s * jax.random.normal(ks[2], (1, hidden), jnp.float32),
        "w_st_x":  s * jax.random.normal(ks[3], (state_dim, hidden), jnp.float32),
        "w_st_l":  s * jax.random.normal(ks[4], (t5_dim, hidden), jnp.float32),
        "b_st":    s * jax.random.normal(ks[5], (1, hidden), jnp.float32),
        "w_ih":    s * jax.random.normal(ks[6], (2 * hidden, 4 * lstm_h), jnp.float32),
        "w_hh":    s * jax.random.normal(ks[7], (lstm_h, 4 * lstm_h), jnp.float32),
        "b_lstm":  s * jax.random.normal(ks[8], (1, 4 * lstm_h), jnp.float32),
        "w_a1":    s * jax.random.normal(ks[9], (lstm_h, hidden), jnp.float32),
        "b_a1":    s * jax.random.normal(ks[10], (1, hidden), jnp.float32),
        "w_a2":    s * jax.random.normal(ks[11], (hidden, action_dim), jnp.float32),
        "b_a2":    s * jax.random.normal(ks[12], (1, action_dim), jnp.float32),
    }


if __name__ == "__main__":
    # Small, module-consistent shapes (image_dim downscaled from 128 -> 8).
    B, T = 2, 8
    state_dim, action_dim = 9, 7
    hidden, lstm_h = 32, 16
    t5_dim = 64
    C, Himg, Wimg = 3, 8, 8
    img_flat_dim = C * Himg * Wimg

    key = jax.random.PRNGKey(0)
    k_param, k_state, k_img, k_lang = jax.random.split(key, 4)

    params = init_params(
        k_param,
        state_dim=state_dim, img_flat_dim=img_flat_dim, t5_dim=t5_dim,
        hidden=hidden, lstm_h=lstm_h, action_dim=action_dim,
    )

    state_seq = jax.random.normal(k_state, (B, T, state_dim), jnp.float32)
    image_seq = jax.random.normal(k_img, (B, T, C, Himg, Wimg), jnp.float32)
    lang_emb = jax.random.normal(k_lang, (B, t5_dim), jnp.float32)

    out = generator_forward(params, state_seq, image_seq, lang_emb)
    out = jax.block_until_ready(out)

    ref = generator_reference(params, state_seq, image_seq, lang_emb)
    assert out.shape == (B, action_dim)
    assert jnp.allclose(out, ref, atol=1e-4, rtol=1e-4), "mismatch vs reference"

    print("KERNEL_OK")
</pallas_src>

<mosaic_0001>
module attributes {stable_mosaic.version = 11 : i64} {
  func.func @_generator_kernel(%arg0: memref<16x9xf32, #tpu.memory_space<vmem>>, %arg1: memref<16x192xf32, #tpu.memory_space<vmem>>, %arg2: memref<2x64xf32, #tpu.memory_space<vmem>>, %arg3: memref<192x32xf32, #tpu.memory_space<vmem>>, %arg4: memref<64x32xf32, #tpu.memory_space<vmem>>, %arg5: memref<1x32xf32, #tpu.memory_space<vmem>>, %arg6: memref<9x32xf32, #tpu.memory_space<vmem>>, %arg7: memref<64x32xf32, #tpu.memory_space<vmem>>, %arg8: memref<1x32xf32, #tpu.memory_space<vmem>>, %arg9: memref<32x64xf32, #tpu.memory_space<vmem>>, %arg10: memref<32x64xf32, #tpu.memory_space<vmem>>, %arg11: memref<1x64xf32, #tpu.memory_space<vmem>>, %arg12: memref<4x16x16xf32, #tpu.memory_space<vmem>>, %arg13: memref<16x32xf32, #tpu.memory_space<vmem>>, %arg14: memref<1x32xf32, #tpu.memory_space<vmem>>, %arg15: memref<32x128xf32, #tpu.memory_space<vmem>>, %arg16: memref<1x128xf32, #tpu.memory_space<vmem>>, %arg17: memref<2x128xf32, #tpu.memory_space<vmem>>) attributes {dimension_semantics = [], scalar_prefetch = 0 : i64, scratch_operands = 0 : i64, tpu.core_type = #tpu.core_type<tc>} {
    %c0 = arith.constant 0 : index
    %c0_0 = arith.constant 0 : index
    %0 = vector.load %arg2[%c0, %c0_0] : memref<2x64xf32, #tpu.memory_space<vmem>>, vector<2x64xf32>
    %c0_1 = arith.constant 0 : index
    %c0_2 = arith.constant 0 : index
    %1 = vector.load %arg4[%c0_1, %c0_2] : memref<64x32xf32, #tpu.memory_space<vmem>>, vector<64x32xf32>
    %cst = arith.constant dense<0.000000e+00> : vector<2x32xf32>
    %2 = tpu.matmul %0, %1, %cst {dimension_numbers = #tpu.dot_dimension_numbers<[1], [0], [0], [1], [0, 0, 1, 1], [], []>} : vector<2x64xf32>, vector<64x32xf32>, vector<2x32xf32> -> vector<2x32xf32>
    %c0_3 = arith.constant 0 : index
    %c0_4 = arith.constant 0 : index
    %3 = vector.load %arg5[%c0_3, %c0_4] : memref<1x32xf32, #tpu.memory_space<vmem>>, vector<1x32xf32>
    %4 = vector.broadcast %3 : vector<1x32xf32> to vector<2x32xf32>
    %5 = arith.addf %2, %4 : vector<2x32xf32>
    %c0_5 = arith.constant 0 : index
    %c0_6 = arith.constant 0 : index
    %6 = vector.load %arg7[%c0_5, %c0_6] : memref<64x32xf32, #tpu.memory_space<vmem>>, vector<64x32xf32>
    %cst_7 = arith.constant dense<0.000000e+00> : vector<2x32xf32>
    %7 = tpu.matmul %0, %6, %cst_7 {dimension_numbers = #tpu.dot_dimension_numbers<[1], [0], [0], [1], [0, 0, 1, 1], [], []>} : vector<2x64xf32>, vector<64x32xf32>, vector<2x32xf32> -> vector<2x32xf32>
    %c0_8 = arith.constant 0 : index
    %c0_9 = arith.constant 0 : index
    %8 = vector.load %arg8[%c0_8, %c0_9] : memref<1x32xf32, #tpu.memory_space<vmem>>, vector<1x32xf32>
    %9 = vector.broadcast %8 : vector<1x32xf32> to vector<2x32xf32>
    %10 = arith.addf %7, %9 : vector<2x32xf32>
    %11 = tpu.concatenate %5, %5, %5, %5, %5, %5, %5, %5 in 0 : vector<2x32xf32>, vector<2x32xf32>, vector<2x32xf32>, vector<2x32xf32>, vector<2x32xf32>, vector<2x32xf32>, vector<2x32xf32>, vector<2x32xf32> -> vector<16x32xf32>
    %12 = tpu.concatenate %10, %10, %10, %10, %10, %10, %10, %10 in 0 : vector<2x32xf32>, vector<2x32xf32>, vector<2x32xf32>, vector<2x32xf32>, vector<2x32xf32>, vector<2x32xf32>, vector<2x32xf32>, vector<2x32xf32> -> vector<16x32xf32>
    %c0_10 = arith.constant 0 : index
    %c0_11 = arith.constant 0 : index
    %13 = vector.load %arg1[%c0_10, %c0_11] : memref<16x192xf32, #tpu.memory_space<vmem>>, vector<16x192xf32>
    %c0_12 = arith.constant 0 : index
    %c0_13 = arith.constant 0 : index
    %14 = vector.load %arg3[%c0_12, %c0_13] : memref<192x32xf32, #tpu.memory_space<vmem>>, vector<192x32xf32>
    %cst_14 = arith.constant dense<0.000000e+00> : vector<16x32xf32>
    %15 = tpu.matmul %13, %14, %cst_14 {dimension_numbers = #tpu.dot_dimension_numbers<[1], [0], [0], [1], [0, 0, 1, 1], [], []>} : vector<16x192xf32>, vector<192x32xf32>, vector<16x32xf32> -> vector<16x32xf32>
    %16 = arith.addf %15, %11 : vector<16x32xf32>
    %cst_15 = arith.constant 0.000000e+00 : f32
    %17 = vector.broadcast %cst_15 : f32 to vector<16x32xf32>
    %18 = arith.maximumf %16, %17 : vector<16x32xf32>
    %c0_16 = arith.constant 0 : index
    %c0_17 = arith.constant 0 : index
    %19 = vector.load %arg0[%c0_16, %c0_17] : memref<16x9xf32, #tpu.memory_space<vmem>>, vector<16x9xf32>
    %c0_18 = arith.constant 0 : index
    %c0_19 = arith.constant 0 : index
    %20 = vector.load %arg6[%c0_18, %c0_19] : memref<9x32xf32, #tpu.memory_space<vmem>>, vector<9x32xf32>
    %cst_20 = arith.constant dense<0.000000e+00> : vector<16x32xf32>
    %21 = tpu.matmul %19, %20, %cst_20 {dimension_numbers = #tpu.dot_dimension_numbers<[1], [0], [0], [1], [0, 0, 1, 1], [], []>} : vector<16x9xf32>, vector<9x32xf32>, vector<16x32xf32> -> vector<16x32xf32>
    %22 = arith.addf %21, %12 : vector<16x32xf32>
    %cst_21 = arith.constant 0.000000e+00 : f32
    %23 = vector.broadcast %cst_21 : f32 to vector<16x32xf32>
    %24 = arith.maximumf %22, %23 : vector<16x32xf32>
    %c0_22 = arith.constant 0 : index
    %c0_23 = arith.constant 0 : index
    %25 = vector.load %arg9[%c0_22, %c0_23] : memref<32x64xf32, #tpu.memory_space<vmem>>, vector<32x64xf32>
    %cst_24 = arith.constant dense<0.000000e+00> : vector<16x64xf32>
    %26 = tpu.matmul %24, %25, %cst_24 {dimension_numbers = #tpu.dot_dimension_numbers<[1], [0], [0], [1], [0, 0, 1, 1], [], []>} : vector<16x32xf32>, vector<32x64xf32>, vector<16x64xf32> -> vector<16x64xf32>
    %c0_25 = arith.constant 0 : index
    %c0_26 = arith.constant 0 : index
    %27 = vector.load %arg10[%c0_25, %c0_26] : memref<32x64xf32, #tpu.memory_space<vmem>>, vector<32x64xf32>
    %cst_27 = arith.constant dense<0.000000e+00> : vector<16x64xf32>
    %28 = tpu.matmul %18, %27, %cst_27 {dimension_numbers = #tpu.dot_dimension_numbers<[1], [0], [0], [1], [0, 0, 1, 1], [], []>} : vector<16x32xf32>, vector<32x64xf32>, vector<16x64xf32> -> vector<16x64xf32>
    %29 = arith.addf %26, %28 : vector<16x64xf32>
    %c0_28 = arith.constant 0 : index
    %c0_29 = arith.constant 0 : index
    %30 = vector.load %arg11[%c0_28, %c0_29] : memref<1x64xf32, #tpu.memory_space<vmem>>, vector<1x64xf32>
    %31 = vector.broadcast %30 : vector<1x64xf32> to vector<16x64xf32>
    %32 = arith.addf %29, %31 : vector<16x64xf32>
    %33 = vector.extract_strided_slice %32 {offsets = [0, 0], sizes = [16, 16], strides = [1, 1]} : vector<16x64xf32> to vector<16x16xf32>
    %34 = vector.extract_strided_slice %32 {offsets = [0, 16], sizes = [16, 16], strides = [1, 1]} : vector<16x64xf32> to vector<16x16xf32>
    %35 = vector.extract_strided_slice %32 {offsets = [0, 32], sizes = [16, 16], strides = [1, 1]} : vector<16x64xf32> to vector<16x16xf32>
    %36 = vector.extract_strided_slice %32 {offsets = [0, 48], sizes = [16, 16], strides = [1, 1]} : vector<16x64xf32> to vector<16x16xf32>
    %c0_30 = arith.constant 0 : index
    %c0_31 = arith.constant 0 : index
    %c0_32 = arith.constant 0 : index
    %37 = vector.load %arg12[%c0_30, %c0_31, %c0_32] : memref<4x16x16xf32, #tpu.memory_space<vmem>>, vector<1x16x16xf32>
    %38 = vector.shape_cast %37 : vector<1x16x16xf32> to vector<16x16xf32>
    %c1 = arith.constant 1 : index
    %c0_33 = arith.constant 0 : index
    %c0_34 = arith.constant 0 : index
    %39 = vector.load %arg12[%c1, %c0_33, %c0_34] : memref<4x16x16xf32, #tpu.memory_space<vmem>>, vector<1x16x16xf32>
    %40 = vector.shape_cast %39 : vector<1x16x16xf32> to vector<16x16xf32>
    %c2 = arith.constant 2 : index
    %c0_35 = arith.constant 0 : index
    %c0_36 = arith.constant 0 : index
    %41 = vector.load %arg12[%c2, %c0_35, %c0_36] : memref<4x16x16xf32, #tpu.memory_space<vmem>>, vector<1x16x16xf32>
    %42 = vector.shape_cast %41 : vector<1x16x16xf32> to vector<16x16xf32>
    %c3 = arith.constant 3 : index
    %c0_37 = arith.constant 0 : index
    %c0_38 = arith.constant 0 : index
    %43 = vector.load %arg12[%c3, %c0_37, %c0_38] : memref<4x16x16xf32, #tpu.memory_space<vmem>>, vector<1x16x16xf32>
    %44 = vector.shape_cast %43 : vector<1x16x16xf32> to vector<16x16xf32>
    %cst_39 = arith.constant 0.000000e+00 : f32
    %45 = vector.broadcast %cst_39 : f32 to vector<2x16xf32>
    %cst_40 = arith.constant 0.000000e+00 : f32
    %46 = vector.broadcast %cst_40 : f32 to vector<2x16xf32>
    %47 = vector.extract_strided_slice %33 {offsets = [0, 0], sizes = [2, 16], strides = [1, 1]} : vector<16x16xf32> to vector<2x16xf32>
    %cst_41 = arith.constant dense<0.000000e+00> : vector<2x16xf32>
    %48 = tpu.matmul %45, %38, %cst_41 {dimension_numbers = #tpu.dot_dimension_numbers<[1], [0], [0], [1], [0, 0, 1, 1], [], []>} : vector<2x16xf32>, vector<16x16xf32>, vector<2x16xf32> -> vector<2x16xf32>
    %49 = arith.addf %47, %48 : vector<2x16xf32>
    %50 = arith.negf %49 : vector<2x16xf32>
    %51 = math.exp %50 : vector<2x16xf32>
    %cst_42 = arith.constant 1.000000e+00 : f32
    %52 = vector.broadcast %cst_42 : f32 to vector<2x16xf32>
    %53 = arith.addf %52, %51 : vector<2x16xf32>
    %54 = arith.divf %52, %53 : vector<2x16xf32>
    %55 = vector.extract_strided_slice %34 {offsets = [0, 0], sizes = [2, 16], strides = [1, 1]} : vector<16x16xf32> to vector<2x16xf32>
    %cst_43 = arith.constant dense<0.000000e+00> : vector<2x16xf32>
    %56 = tpu.matmul %45, %40, %cst_43 {dimension_numbers = #tpu.dot_dimension_numbers<[1], [0], [0], [1], [0, 0, 1, 1], [], []>} : vector<2x16xf32>, vector<16x16xf32>, vector<2x16xf32> -> vector<2x16xf32>
    %57 = arith.addf %55, %56 : vector<2x16xf32>
    %58 = arith.negf %57 : vector<2x16xf32>
    %59 = math.exp %58 : vector<2x16xf32>
    %cst_44 = arith.constant 1.000000e+00 : f32
    %60 = vector.broadcast %cst_44 : f32 to vector<2x16xf32>
    %61 = arith.addf %60, %59 : vector<2x16xf32>
    %62 = arith.divf %60, %61 : vector<2x16xf32>
    %63 = vector.extract_strided_slice %35 {offsets = [0, 0], sizes = [2, 16], strides = [1, 1]} : vector<16x16xf32> to vector<2x16xf32>
    %cst_45 = arith.constant dense<0.000000e+00> : vector<2x16xf32>
    %64 = tpu.matmul %45, %42, %cst_45 {dimension_numbers = #tpu.dot_dimension_numbers<[1], [0], [0], [1], [0, 0, 1, 1], [], []>} : vector<2x16xf32>, vector<16x16xf32>, vector<2x16xf32> -> vector<2x16xf32>
    %65 = arith.addf %63, %64 : vector<2x16xf32>
    %66 = math.tanh %65 : vector<2x16xf32>
    %67 = vector.extract_strided_slice %36 {offsets = [0, 0], sizes = [2, 16], strides = [1, 1]} : vector<16x16xf32> to vector<2x16xf32>
    %cst_46 = arith.constant dense<0.000000e+00> : vector<2x16xf32>
    %68 = tpu.matmul %45, %44, %cst_46 {dimension_numbers = #tpu.dot_dimension_numbers<[1], [0], [0], [1], [0, 0, 1, 1], [], []>} : vector<2x16xf32>, vector<16x16xf32>, vector<2x16xf32> -> vector<2x16xf32>
    %69 = arith.addf %67, %68 : vector<2x16xf32>
    %70 = arith.negf %69 : vector<2x16xf32>
    %71 = math.exp %70 : vector<2x16xf32>
    %cst_47 = arith.constant 1.000000e+00 : f32
    %72 = vector.broadcast %cst_47 : f32 to vector<2x16xf32>
    %73 = arith.addf %72, %71 : vector<2x16xf32>
    %74 = arith.divf %72, %73 : vector<2x16xf32>
    %75 = arith.mulf %62, %46 : vector<2x16xf32>
    %76 = arith.mulf %54, %66 : vector<2x16xf32>
    %77 = arith.addf %75, %76 : vector<2x16xf32>
    %78 = math.tanh %77 : vector<2x16xf32>
    %79 = arith.mulf %74, %78 : vector<2x16xf32>
    %80 = vector.extract_strided_slice %33 {offsets = [2, 0], sizes = [2, 16], strides = [1, 1]} : vector<16x16xf32> to vector<2x16xf32>
    %cst_48 = arith.constant dense<0.000000e+00> : vector<2x16xf32>
    %81 = tpu.matmul %79, %38, %cst_48 {dimension_numbers = #tpu.dot_dimension_numbers<[1], [0], [0], [1], [0, 0, 1, 1], [], []>} : vector<2x16xf32>, vector<16x16xf32>, vector<2x16xf32> -> vector<2x16xf32>
    %82 = arith.addf %80, %81 : vector<2x16xf32>
    %83 = arith.negf %82 : vector<2x16xf32>
    %84 = math.exp %83 : vector<2x16xf32>
    %cst_49 = arith.constant 1.000000e+00 : f32
    %85 = vector.broadcast %cst_49 : f32 to vector<2x16xf32>
    %86 = arith.addf %85, %84 : vector<2x16xf32>
    %87 = arith.divf %85, %86 : vector<2x16xf32>
    %88 = vector.extract_strided_slice %34 {offsets = [2, 0], sizes = [2, 16], strides = [1, 1]} : vector<16x16xf32> to vector<2x16xf32>
    %cst_50 = arith.constant dense<0.000000e+00> : vector<2x16xf32>
    %89 = tpu.matmul %79, %40, %cst_50 {dimension_numbers = #tpu.dot_dimension_numbers<[1], [0], [0], [1], [0, 0, 1, 1], [], []>} : vector<2x16xf32>, vector<16x16xf32>, vector<2x16xf32> -> vector<2x16xf32>
    %90 = arith.addf %88, %89 : vector<2x16xf32>
    %91 = arith.negf %90 : vector<2x16xf32>
    %92 = math.exp %91 : vector<2x16xf32>
    %cst_51 = arith.constant 1.000000e+00 : f32
    %93 = vector.broadcast %cst_51 : f32 to vector<2x16xf32>
    %94 = arith.addf %93, %92 : vector<2x16xf32>
    %95 = arith.divf %93, %94 : vector<2x16xf32>
    %96 = vector.extract_strided_slice %35 {offsets = [2, 0], sizes = [2, 16], strides = [1, 1]} : vector<16x16xf32> to vector<2x16xf32>
    %cst_52 = arith.constant dense<0.000000e+00> : vector<2x16xf32>
    %97 = tpu.matmul %79, %42, %cst_52 {dimension_numbers = #tpu.dot_dimension_numbers<[1], [0], [0], [1], [0, 0, 1, 1], [], []>} : vector<2x16xf32>, vector<16x16xf32>, vector<2x16xf32> -> vector<2x16xf32>
    %98 = arith.addf %96, %97 : vector<2x16xf32>
    %99 = math.tanh %98 : vector<2x16xf32>
    %100 = vector.extract_strided_slice %36 {offsets = [2, 0], sizes = [2, 16], strides = [1, 1]} : vector<16x16xf32> to vector<2x16xf32>
    %cst_53 = arith.constant dense<0.000000e+00> : vector<2x16xf32>
    %101 = tpu.matmul %79, %44, %cst_53 {dimension_numbers = #tpu.dot_dimension_numbers<[1], [0], [0], [1], [0, 0, 1, 1], [], []>} : vector<2x16xf32>, vector<16x16xf32>, vector<2x16xf32> -> vector<2x16xf32>
    %102 = arith.addf %100, %101 : vector<2x16xf32>
    %103 = arith.negf %102 : vector<2x16xf32>
    %104 = math.exp %103 : vector<2x16xf32>
    %cst_54 = arith.constant 1.000000e+00 : f32
    %105 = vector.broadcast %cst_54 : f32 to vector<2x16xf32>
    %106 = arith.addf %105, %104 : vector<2x16xf32>
    %107 = arith.divf %105, %106 : vector<2x16xf32>
    %108 = arith.mulf %95, %77 : vector<2x16xf32>
    %109 = arith.mulf %87, %99 : vector<2x16xf32>
    %110 = arith.addf %108, %109 : vector<2x16xf32>
    %111 = math.tanh %110 : vector<2x16xf32>
    %112 = arith.mulf %107, %111 : vector<2x16xf32>
    %113 = vector.extract_strided_slice %33 {offsets = [4, 0], sizes = [2, 16], strides = [1, 1]} : vector<16x16xf32> to vector<2x16xf32>
    %cst_55 = arith.constant dense<0.000000e+00> : vector<2x16xf32>
    %114 = tpu.matmul %112, %38, %cst_55 {dimension_numbers = #tpu.dot_dimension_numbers<[1], [0], [0], [1], [0, 0, 1, 1], [], []>} : vector<2x16xf32>, vector<16x16xf32>, vector<2x16xf32> -> vector<2x16xf32>
    %115 = arith.addf %113, %114 : vector<2x16xf32>
    %116 = arith.negf %115 : vector<2x16xf32>
    %117 = math.exp %116 : vector<2x16xf32>
    %cst_56 = arith.constant 1.000000e+00 : f32
    %118 = vector.broadcast %cst_56 : f32 to vector<2x16xf32>
    %119 = arith.addf %118, %117 : vector<2x16xf32>
    %120 = arith.divf %118, %119 : vector<2x16xf32>
    %121 = vector.extract_strided_slice %34 {offsets = [4, 0], sizes = [2, 16], strides = [1, 1]} : vector<16x16xf32> to vector<2x16xf32>
    %cst_57 = arith.constant dense<0.000000e+00> : vector<2x16xf32>
    %122 = tpu.matmul %112, %40, %cst_57 {dimension_numbers = #tpu.dot_dimension_numbers<[1], [0], [0], [1], [0, 0, 1, 1], [], []>} : vector<2x16xf32>, vector<16x16xf32>, vector<2x16xf32> -> vector<2x16xf32>
    %123 = arith.addf %121, %122 : vector<2x16xf32>
    %124 = arith.negf %123 : vector<2x16xf32>
    %125 = math.exp %124 : vector<2x16xf32>
    %cst_58 = arith.constant 1.000000e+00 : f32
    %126 = vector.broadcast %cst_58 : f32 to vector<2x16xf32>
    %127 = arith.addf %126, %125 : vector<2x16xf32>
    %128 = arith.divf %126, %127 : vector<2x16xf32>
    %129 = vector.extract_strided_slice %35 {offsets = [4, 0], sizes = [2, 16], strides = [1, 1]} : vector<16x16xf32> to vector<2x16xf32>
    %cst_59 = arith.constant dense<0.000000e+00> : vector<2x16xf32>
    %130 = tpu.matmul %112, %42, %cst_59 {dimension_numbers = #tpu.dot_dimension_numbers<[1], [0], [0], [1], [0, 0, 1, 1], [], []>} : vector<2x16xf32>, vector<16x16xf32>, vector<2x16xf32> -> vector<2x16xf32>
    %131 = arith.addf %129, %130 : vector<2x16xf32>
    %132 = math.tanh %131 : vector<2x16xf32>
    %133 = vector.extract_strided_slice %36 {offsets = [4, 0], sizes = [2, 16], strides = [1, 1]} : vector<16x16xf32> to vector<2x16xf32>
    %cst_60 = arith.constant dense<0.000000e+00> : vector<2x16xf32>
    %134 = tpu.matmul %112, %44, %cst_60 {dimension_numbers = #tpu.dot_dimension_numbers<[1], [0], [0], [1], [0, 0, 1, 1], [], []>} : vector<2x16xf32>, vector<16x16xf32>, vector<2x16xf32> -> vector<2x16xf32>
    %135 = arith.addf %133, %134 : vector<2x16xf32>
    %136 = arith.negf %135 : vector<2x16xf32>
    %137 = math.exp %136 : vector<2x16xf32>
    %cst_61 = arith.constant 1.000000e+00 : f32
    %138 = vector.broadcast %cst_61 : f32 to vector<2x16xf32>
    %139 = arith.addf %138, %137 : vector<2x16xf32>
    %140 = arith.divf %138, %139 : vector<2x16xf32>
    %141 = arith.mulf %128, %110 : vector<2x16xf32>
    %142 = arith.mulf %120, %132 : vector<2x16xf32>
    %143 = arith.addf %141, %142 : vector<2x16xf32>
    %144 = math.tanh %143 : vector<2x16xf32>
    %145 = arith.mulf %140, %144 : vector<2x16xf32>
    %146 = vector.extract_strided_slice %33 {offsets = [6, 0], sizes = [2, 16], strides = [1, 1]} : vector<16x16xf32> to vector<2x16xf32>
    %cst_62 = arith.constant dense<0.000000e+00> : vector<2x16xf32>
    %147 = tpu.matmul %145, %38, %cst_62 {dimension_numbers = #tpu.dot_dimension_numbers<[1], [0], [0], [1], [0, 0, 1, 1], [], []>} : vector<2x16xf32>, vector<16x16xf32>, vector<2x16xf32> -> vector<2x16xf32>
    %148 = arith.addf %146, %147 : vector<2x16xf32>
    %149 = arith.negf %148 : vector<2x16xf32>
    %150 = math.exp %149 : vector<2x16xf32>
    %cst_63 = arith.constant 1.000000e+00 : f32
    %151 = vector.broadcast %cst_63 : f32 to vector<2x16xf32>
    %152 = arith.addf %151, %150 : vector<2x16xf32>
    %153 = arith.divf %151, %152 : vector<2x16xf32>
    %154 = vector.extract_strided_slice %34 {offsets = [6, 0], sizes = [2, 16], strides = [1, 1]} : vector<16x16xf32> to vector<2x16xf32>
    %cst_64 = arith.constant dense<0.000000e+00> : vector<2x16xf32>
    %155 = tpu.matmul %145, %40, %cst_64 {dimension_numbers = #tpu.dot_dimension_numbers<[1], [0], [0], [1], [0, 0, 1, 1], [], []>} : vector<2x16xf32>, vector<16x16xf32>, vector<2x16xf32> -> vector<2x16xf32>
    %156 = arith.addf %154, %155 : vector<2x16xf32>
    %157 = arith.negf %156 : vector<2x16xf32>
    %158 = math.exp %157 : vector<2x16xf32>
    %cst_65 = arith.constant 1.000000e+00 : f32
    %159 = vector.broadcast %cst_65 : f32 to vector<2x16xf32>
    %160 = arith.addf %159, %158 : vector<2x16xf32>
    %161 = arith.divf %159, %160 : vector<2x16xf32>
    %162 = vector.extract_strided_slice %35 {offsets = [6, 0], sizes = [2, 16], strides = [1, 1]} : vector<16x16xf32> to vector<2x16xf32>
    %cst_66 = arith.constant dense<0.000000e+00> : vector<2x16xf32>
    %163 = tpu.matmul %145, %42, %cst_66 {dimension_numbers = #tpu.dot_dimension_numbers<[1], [0], [0], [1], [0, 0, 1, 1], [], []>} : vector<2x16xf32>, vector<16x16xf32>, vector<2x16xf32> -> vector<2x16xf32>
    %164 = arith.addf %162, %163 : vector<2x16xf32>
    %165 = math.tanh %164 : vector<2x16xf32>
    %166 = vector.extract_strided_slice %36 {offsets = [6, 0], sizes = [2, 16], strides = [1, 1]} : vector<16x16xf32> to vector<2x16xf32>
    %cst_67 = arith.constant dense<0.000000e+00> : vector<2x16xf32>
    %167 = tpu.matmul %145, %44, %cst_67 {dimension_numbers = #tpu.dot_dimension_numbers<[1], [0], [0], [1], [0, 0, 1, 1], [], []>} : vector<2x16xf32>, vector<16x16xf32>, vector<2x16xf32> -> vector<2x16xf32>
    %168 = arith.addf %166, %167 : vector<2x16xf32>
    %169 = arith.negf %168 : vector<2x16xf32>
    %170 = math.exp %169 : vector<2x16xf32>
    %cst_68 = arith.constant 1.000000e+00 : f32
    %171 = vector.broadcast %cst_68 : f32 to vector<2x16xf32>
    %172 = arith.addf %171, %170 : vector<2x16xf32>
    %173 = arith.divf %171, %172 : vector<2x16xf32>
    %174 = arith.mulf %161, %143 : vector<2x16xf32>
    %175 = arith.mulf %153, %165 : vector<2x16xf32>
    %176 = arith.addf %174, %175 : vector<2x16xf32>
    %177 = math.tanh %176 : vector<2x16xf32>
    %178 = arith.mulf %173, %177 : vector<2x16xf32>
    %179 = vector.extract_strided_slice %33 {offsets = [8, 0], sizes = [2, 16], strides = [1, 1]} : vector<16x16xf32> to vector<2x16xf32>
    %cst_69 = arith.constant dense<0.000000e+00> : vector<2x16xf32>
    %180 = tpu.matmul %178, %38, %cst_69 {dimension_numbers = #tpu.dot_dimension_numbers<[1], [0], [0], [1], [0, 0, 1, 1], [], []>} : vector<2x16xf32>, vector<16x16xf32>, vector<2x16xf32> -> vector<2x16xf32>
    %181 = arith.addf %179, %180 : vector<2x16xf32>
    %182 = arith.negf %181 : vector<2x16xf32>
    %183 = math.exp %182 : vector<2x16xf32>
    %cst_70 = arith.constant 1.000000e+00 : f32
    %184 = vector.broadcast %cst_70 : f32 to vector<2x16xf32>
    %185 = arith.addf %184, %183 : vector<2x16xf32>
    %186 = arith.divf %184, %185 : vector<2x16xf32>
    %187 = vector.extract_strided_slice %34 {offsets = [8, 0], sizes = [2, 16], strides = [1, 1]} : vector<16x16xf32> to vector<2x16xf32>
    %cst_71 = arith.constant dense<0.000000e+00> : vector<2x16xf32>
    %188 = tpu.matmul %178, %40, %cst_71 {dimension_numbers = #tpu.dot_dimension_numbers<[1], [0], [0], [1], [0, 0, 1, 1], [], []>} : vector<2x16xf32>, vector<16x16xf32>, vector<2x16xf32> -> vector<2x16xf32>
    %189 = arith.addf %187, %188 : vector<2x16xf32>
    %190 = arith.negf %189 : vector<2x16xf32>
    %191 = math.exp %190 : vector<2x16xf32>
    %cst_72 = arith.constant 1.000000e+00 : f32
    %192 = vector.broadcast %cst_72 : f32 to vector<2x16xf32>
    %193 = arith.addf %192, %191 : vector<2x16xf32>
    %194 = arith.divf %192, %193 : vector<2x16xf32>
    %195 = vector.extract_strided_slice %35 {offsets = [8, 0], sizes = [2, 16], strides = [1, 1]} : vector<16x16xf32> to vector<2x16xf32>
    %cst_73 = arith.constant dense<0.000000e+00> : vector<2x16xf32>
    %196 = tpu.matmul %178, %42, %cst_73 {dimension_numbers = #tpu.dot_dimension_numbers<[1], [0], [0], [1], [0, 0, 1, 1], [], []>} : vector<2x16xf32>, vector<16x16xf32>, vector<2x16xf32> -> vector<2x16xf32>
    %197 = arith.addf %195, %196 : vector<2x16xf32>
    %198 = math.tanh %197 : vector<2x16xf32>
    %199 = vector.extract_strided_slice %36 {offsets = [8, 0], sizes = [2, 16], strides = [1, 1]} : vector<16x16xf32> to vector<2x16xf32>
    %cst_74 = arith.constant dense<0.000000e+00> : vector<2x16xf32>
    %200 = tpu.matmul %178, %44, %cst_74 {dimension_numbers = #tpu.dot_dimension_numbers<[1], [0], [0], [1], [0, 0, 1, 1], [], []>} : vector<2x16xf32>, vector<16x16xf32>, vector<2x16xf32> -> vector<2x16xf32>
    %201 = arith.addf %199, %200 : vector<2x16xf32>
    %202 = arith.negf %201 : vector<2x16xf32>
    %203 = math.exp %202 : vector<2x16xf32>
    %cst_75 = arith.constant 1.000000e+00 : f32
    %204 = vector.broadcast %cst_75 : f32 to vector<2x16xf32>
    %205 = arith.addf %204, %203 : vector<2x16xf32>
    %206 = arith.divf %204, %205 : vector<2x16xf32>
    %207 = arith.mulf %194, %176 : vector<2x16xf32>
    %208 = arith.mulf %186, %198 : vector<2x16xf32>
    %209 = arith.addf %207, %208 : vector<2x16xf32>
    %210 = math.tanh %209 : vector<2x16xf32>
    %211 = arith.mulf %206, %210 : vector<2x16xf32>
    %212 = vector.extract_strided_slice %33 {offsets = [10, 0], sizes = [2, 16], strides = [1, 1]} : vector<16x16xf32> to vector<2x16xf32>
    %cst_76 = arith.constant dense<0.000000e+00> : vector<2x16xf32>
    %213 = tpu.matmul %211, %38, %cst_76 {dimension_numbers = #tpu.dot_dimension_numbers<[1], [0], [0], [1], [0, 0, 1, 1], [], []>} : vector<2x16xf32>, vector<16x16xf32>, vector<2x16xf32> -> vector<2x16xf32>
    %214 = arith.addf %212, %213 : vector<2x16xf32>
    %215 = arith.negf %214 : vector<2x16xf32>
    %216 = math.exp %215 : vector<2x16xf32>
    %cst_77 = arith.constant 1.000000e+00 : f32
    %217 = vector.broadcast %cst_77 : f32 to vector<2x16xf32>
    %218 = arith.addf %217, %216 : vector<2x16xf32>
    %219 = arith.divf %217, %218 : vector<2x16xf32>
    %220 = vector.extract_strided_slice %34 {offsets = [10, 0], sizes = [2, 16], strides = [1, 1]} : vector<16x16xf32> to vector<2x16xf32>
    %cst_78 = arith.constant dense<0.000000e+00> : vector<2x16xf32>
    %221 = tpu.matmul %211, %40, %cst_78 {dimension_numbers = #tpu.dot_dimension_numbers<[1], [0], [0], [1], [0, 0, 1, 1], [], []>} : vector<2x16xf32>, vector<16x16xf32>, vector<2x16xf32> -> vector<2x16xf32>
    %222 = arith.addf %220, %221 : vector<2x16xf32>
    %223 = arith.negf %222 : vector<2x16xf32>
    %224 = math.exp %223 : vector<2x16xf32>
    %cst_79 = arith.constant 1.000000e+00 : f32
    %225 = vector.broadcast %cst_79 : f32 to vector<2x16xf32>
    %226 = arith.addf %225, %224 : vector<2x16xf32>
    %227 = arith.divf %225, %226 : vector<2x16xf32>
    %228 = vector.extract_strided_slice %35 {offsets = [10, 0], sizes = [2, 16], strides = [1, 1]} : vector<16x16xf32> to vector<2x16xf32>
    %cst_80 = arith.constant dense<0.000000e+00> : vector<2x16xf32>
    %229 = tpu.matmul %211, %42, %cst_80 {dimension_numbers = #tpu.dot_dimension_numbers<[1], [0], [0], [1], [0, 0, 1, 1], [], []>} : vector<2x16xf32>, vector<16x16xf32>, vector<2x16xf32> -> vector<2x16xf32>
    %230 = arith.addf %228, %229 : vector<2x16xf32>
    %231 = math.tanh %230 : vector<2x16xf32>
    %232 = vector.extract_strided_slice %36 {offsets = [10, 0], sizes = [2, 16], strides = [1, 1]} : vector<16x16xf32> to vector<2x16xf32>
    %cst_81 = arith.constant dense<0.000000e+00> : vector<2x16xf32>
    %233 = tpu.matmul %211, %44, %cst_81 {dimension_numbers = #tpu.dot_dimension_numbers<[1], [0], [0], [1], [0, 0, 1, 1], [], []>} : vector<2x16xf32>, vector<16x16xf32>, vector<2x16xf32> -> vector<2x16xf32>
    %234 = arith.addf %232, %233 : vector<2x16xf32>
    %235 = arith.negf %234 : vector<2x16xf32>
    %236 = math.exp %235 : vector<2x16xf32>
    %cst_82 = arith.constant 1.000000e+00 : f32
    %237 = vector.broadcast %cst_82 : f32 to vector<2x16xf32>
    %238 = arith.addf %237, %236 : vector<2x16xf32>
    %239 = arith.divf %237, %238 : vector<2x16xf32>
    %240 = arith.mulf %227, %209 : vector<2x16xf32>
    %241 = arith.mulf %219, %231 : vector<2x16xf32>
    %242 = arith.addf %240, %241 : vector<2x16xf32>
    %243 = math.tanh %242 : vector<2x16xf32>
    %244 = arith.mulf %239, %243 : vector<2x16xf32>
    %245 = vector.extract_strided_slice %33 {offsets = [12, 0], sizes = [2, 16], strides = [1, 1]} : vector<16x16xf32> to vector<2x16xf32>
    %cst_83 = arith.constant dense<0.000000e+00> : vector<2x16xf32>
    %246 = tpu.matmul %244, %38, %cst_83 {dimension_numbers = #tpu.dot_dimension_numbers<[1], [0], [0], [1], [0, 0, 1, 1], [], []>} : vector<2x16xf32>, vector<16x16xf32>, vector<2x16xf32> -> vector<2x16xf32>
    %247 = arith.addf %245, %246 : vector<2x16xf32>
    %248 = arith.negf %247 : vector<2x16xf32>
    %249 = math.exp %248 : vector<2x16xf32>
    %cst_84 = arith.constant 1.000000e+00 : f32
    %250 = vector.broadcast %cst_84 : f32 to vector<2x16xf32>
    %251 = arith.addf %250, %249 : vector<2x16xf32>
    %252 = arith.divf %250, %251 : vector<2x16xf32>
    %253 = vector.extract_strided_slice %34 {offsets = [12, 0], sizes = [2, 16], strides = [1, 1]} : vector<16x16xf32> to vector<2x16xf32>
    %cst_85 = arith.constant dense<0.000000e+00> : vector<2x16xf32>
    %254 = tpu.matmul %244, %40, %cst_85 {dimension_numbers = #tpu.dot_dimension_numbers<[1], [0], [0], [1], [0, 0, 1, 1], [], []>} : vector<2x16xf32>, vector<16x16xf32>, vector<2x16xf32> -> vector<2x16xf32>
    %255 = arith.addf %253, %254 : vector<2x16xf32>
    %256 = arith.negf %255 : vector<2x16xf32>
    %257 = math.exp %256 : vector<2x16xf32>
    %cst_86 = arith.constant 1.000000e+00 : f32
    %258 = vector.broadcast %cst_86 : f32 to vector<2x16xf32>
    %259 = arith.addf %258, %257 : vector<2x16xf32>
    %260 = arith.divf %258, %259 : vector<2x16xf32>
    %261 = vector.extract_strided_slice %35 {offsets = [12, 0], sizes = [2, 16], strides = [1, 1]} : vector<16x16xf32> to vector<2x16xf32>
    %cst_87 = arith.constant dense<0.000000e+00> : vector<2x16xf32>
    %262 = tpu.matmul %244, %42, %cst_87 {dimension_numbers = #tpu.dot_dimension_numbers<[1], [0], [0], [1], [0, 0, 1, 1], [], []>} : vector<2x16xf32>, vector<16x16xf32>, vector<2x16xf32> -> vector<2x16xf32>
    %263 = arith.addf %261, %262 : vector<2x16xf32>
    %264 = math.tanh %263 : vector<2x16xf32>
    %265 = vector.extract_strided_slice %36 {offsets = [12, 0], sizes = [2, 16], strides = [1, 1]} : vector<16x16xf32> to vector<2x16xf32>
    %cst_88 = arith.constant dense<0.000000e+00> : vector<2x16xf32>
    %266 = tpu.matmul %244, %44, %cst_88 {dimension_numbers = #tpu.dot_dimension_numbers<[1], [0], [0], [1], [0, 0, 1, 1], [], []>} : vector<2x16xf32>, vector<16x16xf32>, vector<2x16xf32> -> vector<2x16xf32>
    %267 = arith.addf %265, %266 : vector<2x16xf32>
    %268 = arith.negf %267 : vector<2x16xf32>
    %269 = math.exp %268 : vector<2x16xf32>
    %cst_89 = arith.constant 1.000000e+00 : f32
    %270 = vector.broadcast %cst_89 : f32 to vector<2x16xf32>
    %271 = arith.addf %270, %269 : vector<2x16xf32>
    %272 = arith.divf %270, %271 : vector<2x16xf32>
    %273 = arith.mulf %260, %242 : vector<2x16xf32>
    %274 = arith.mulf %252, %264 : vector<2x16xf32>
    %275 = arith.addf %273, %274 : vector<2x16xf32>
    %276 = math.tanh %275 : vector<2x16xf32>
    %277 = arith.mulf %272, %276 : vector<2x16xf32>
    %278 = vector.extract_strided_slice %33 {offsets = [14, 0], sizes = [2, 16], strides = [1, 1]} : vector<16x16xf32> to vector<2x16xf32>
    %cst_90 = arith.constant dense<0.000000e+00> : vector<2x16xf32>
    %279 = tpu.matmul %277, %38, %cst_90 {dimension_numbers = #tpu.dot_dimension_numbers<[1], [0], [0], [1], [0, 0, 1, 1], [], []>} : vector<2x16xf32>, vector<16x16xf32>, vector<2x16xf32> -> vector<2x16xf32>
    %280 = arith.addf %278, %279 : vector<2x16xf32>
    %281 = arith.negf %280 : vector<2x16xf32>
    %282 = math.exp %281 : vector<2x16xf32>
    %cst_91 = arith.constant 1.000000e+00 : f32
    %283 = vector.broadcast %cst_91 : f32 to vector<2x16xf32>
    %284 = arith.addf %283, %282 : vector<2x16xf32>
    %285 = arith.divf %283, %284 : vector<2x16xf32>
    %286 = vector.extract_strided_slice %34 {offsets = [14, 0], sizes = [2, 16], strides = [1, 1]} : vector<16x16xf32> to vector<2x16xf32>
    %cst_92 = arith.constant dense<0.000000e+00> : vector<2x16xf32>
    %287 = tpu.matmul %277, %40, %cst_92 {dimension_numbers = #tpu.dot_dimension_numbers<[1], [0], [0], [1], [0, 0, 1, 1], [], []>} : vector<2x16xf32>, vector<16x16xf32>, vector<2x16xf32> -> vector<2x16xf32>
    %288 = arith.addf %286, %287 : vector<2x16xf32>
    %289 = arith.negf %288 : vector<2x16xf32>
    %290 = math.exp %289 : vector<2x16xf32>
    %cst_93 = arith.constant 1.000000e+00 : f32
    %291 = vector.broadcast %cst_93 : f32 to vector<2x16xf32>
    %292 = arith.addf %291, %290 : vector<2x16xf32>
    %293 = arith.divf %291, %292 : vector<2x16xf32>
    %294 = vector.extract_strided_slice %35 {offsets = [14, 0], sizes = [2, 16], strides = [1, 1]} : vector<16x16xf32> to vector<2x16xf32>
    %cst_94 = arith.constant dense<0.000000e+00> : vector<2x16xf32>
    %295 = tpu.matmul %277, %42, %cst_94 {dimension_numbers = #tpu.dot_dimension_numbers<[1], [0], [0], [1], [0, 0, 1, 1], [], []>} : vector<2x16xf32>, vector<16x16xf32>, vector<2x16xf32> -> vector<2x16xf32>
    %296 = arith.addf %294, %295 : vector<2x16xf32>
    %297 = math.tanh %296 : vector<2x16xf32>
    %298 = vector.extract_strided_slice %36 {offsets = [14, 0], sizes = [2, 16], strides = [1, 1]} : vector<16x16xf32> to vector<2x16xf32>
    %cst_95 = arith.constant dense<0.000000e+00> : vector<2x16xf32>
    %299 = tpu.matmul %277, %44, %cst_95 {dimension_numbers = #tpu.dot_dimension_numbers<[1], [0], [0], [1], [0, 0, 1, 1], [], []>} : vector<2x16xf32>, vector<16x16xf32>, vector<2x16xf32> -> vector<2x16xf32>
    %300 = arith.addf %298, %299 : vector<2x16xf32>
    %301 = arith.negf %300 : vector<2x16xf32>
    %302 = math.exp %301 : vector<2x16xf32>
    %cst_96 = arith.constant 1.000000e+00 : f32
    %303 = vector.broadcast %cst_96 : f32 to vector<2x16xf32>
    %304 = arith.addf %303, %302 : vector<2x16xf32>
    %305 = arith.divf %303, %304 : vector<2x16xf32>
    %306 = arith.mulf %293, %275 : vector<2x16xf32>
    %307 = arith.mulf %285, %297 : vector<2x16xf32>
    %308 = arith.addf %306, %307 : vector<2x16xf32>
    %309 = math.tanh %308 : vector<2x16xf32>
    %310 = arith.mulf %305, %309 : vector<2x16xf32>
    %c0_97 = arith.constant 0 : index
    %c0_98 = arith.constant 0 : index
    %311 = vector.load %arg13[%c0_97, %c0_98] : memref<16x32xf32, #tpu.memory_space<vmem>>, vector<16x32xf32>
    %cst_99 = arith.constant dense<0.000000e+00> : vector<2x32xf32>
    %312 = tpu.matmul %310, %311, %cst_99 {dimension_numbers = #tpu.dot_dimension_numbers<[1], [0], [0], [1], [0, 0, 1, 1], [], []>} : vector<2x16xf32>, vector<16x32xf32>, vector<2x32xf32> -> vector<2x32xf32>
    %c0_100 = arith.constant 0 : index
    %c0_101 = arith.constant 0 : index
    %313 = vector.load %arg14[%c0_100, %c0_101] : memref<1x32xf32, #tpu.memory_space<vmem>>, vector<1x32xf32>
    %314 = vector.broadcast %313 : vector<1x32xf32> to vector<2x32xf32>
    %315 = arith.addf %312, %314 : vector<2x32xf32>
    %cst_102 = arith.constant 0.000000e+00 : f32
    %316 = vector.broadcast %cst_102 : f32 to vector<2x32xf32>
    %317 = arith.maximumf %315, %316 : vector<2x32xf32>
    %c0_103 = arith.constant 0 : index
    %c0_104 = arith.constant 0 : index
    %318 = vector.load %arg15[%c0_103, %c0_104] : memref<32x128xf32, #tpu.memory_space<vmem>>, vector<32x128xf32>
    %cst_105 = arith.constant dense<0.000000e+00> : vector<2x128xf32>
    %319 = tpu.matmul %317, %318, %cst_105 {dimension_numbers = #tpu.dot_dimension_numbers<[1], [0], [0], [1], [0, 0, 1, 1], [], []>} : vector<2x32xf32>, vector<32x128xf32>, vector<2x128xf32> -> vector<2x128xf32>
    %c0_106 = arith.constant 0 : index
    %c0_107 = arith.constant 0 : index
    %320 = vector.load %arg16[%c0_106, %c0_107] : memref<1x128xf32, #tpu.memory_space<vmem>>, vector<1x128xf32>
    %321 = vector.broadcast %320 : vector<1x128xf32> to vector<2x128xf32>
    %322 = arith.addf %319, %321 : vector<2x128xf32>
    %c0_108 = arith.constant 0 : index
    %c0_109 = arith.constant 0 : index
    %323 = vector.load %arg17[%c0_108, %c0_109] : memref<2x128xf32, #tpu.memory_space<vmem>>, vector<2x128xf32>
    tpu.vector_store %arg17[%c0_108, %c0_109], %322 {strides = array<i32>} : memref<2x128xf32, #tpu.memory_space<vmem>>, vector<2x128xf32>,
    return
  }
}

</mosaic_0001>

<bundles_post_ra>
// kernel: tpu_custom_call.1
= control target key start
LH: loop header
LB: loop body
LE: loop exit
PB: predicated region body
PF: predicated region fallthrough
CT: control target
= control target key end

     0   :  { %s5142_s0 = inlined_call_operand.vmem [shape: f32[16,9], index: 0, kind: input, shape index: {}]   ;;  %s5143_s1 = inlined_call_operand.vmem [shape: f32[16,192], index: 1, kind: input, shape index: {}]   ;;  %s5144_s2 = inlined_call_operand.vmem [shape: f32[2,64], index: 2, kind: input, shape index: {}]   ;;  %s5145_s3 = inlined_call_operand.vmem [shape: f32[192,32], index: 3, kind: input, shape index: {}]   ;;  %s5146_s4 = inlined_call_operand.vmem [shape: f32[64,32], index: 4, kind: input, shape index: {}]   ;;  %s5147_s5 = inlined_call_operand.vmem [shape: f32[1,32], index: 5, kind: input, shape index: {}]   ;;  %s5148_s6 = inlined_call_operand.vmem [shape: f32[9,32], index: 6, kind: input, shape index: {}]   ;;  %s5149_s7 = inlined_call_operand.vmem [shape: f32[64,32], index: 7, kind: input, shape index: {}]   ;;  %s5150_s8 = inlined_call_operand.vmem [shape: f32[1,32], index: 8, kind: input, shape index: {}]   ;;  %s5151_s9 = inlined_call_operand.vmem [shape: f32[32,64], index: 9, kind: input, shape index: {}]   ;;  %s5152_s10 = inlined_call_operand.vmem [shape: f32[32,64], index: 10, kind: input, shape index: {}]   ;;  %s5153_s11 = inlined_call_operand.vmem [shape: f32[1,64], index: 11, kind: input, shape index: {}]   ;;  %s5154_s12 = inlined_call_operand.vmem [shape: f32[4,16,16], index: 12, kind: input, shape index: {}]   ;;  %s5155_s13 = inlined_call_operand.vmem [shape: f32[16,32], index: 13, kind: input, shape index: {}]   ;;  %s5156_s14 = inlined_call_operand.vmem [shape: f32[1,32], index: 14, kind: input, shape index: {}]   ;;  %s5157_s15 = inlined_call_operand.vmem [shape: f32[32,128], index: 15, kind: input, shape index: {}]   ;;  %s5158_s16 = inlined_call_operand.vmem [shape: f32[1,128], index: 16, kind: input, shape index: {}]   ;;  %s5159_s17 = inlined_call_operand.hbm [shape: f32[2,128], index: 17, kind: output, shape index: {}]  }
   0x1   :  { %5162 = sst [smem:[#allocation5_spill]] %s5142_s0 }
   0x2   :  { %5163 = sst [smem:[#allocation6_spill]] %s5143_s1 }
   0x3   :  { %v58_v0 = vld [vmem:[%s5146_s4] sm:$0xff]  ;;  %v59_v1 = vld [vmem:[%s5146_s4 + $0x8] sm:$0xff]  ;;  %v60_v2 = vld [vmem:[%s5146_s4 + $0x10] sm:$0xff]  ;;  %v4465_v3 = vmov 0.0|0.0   ;;  %vm4466_vm0 = vmmov 0   ;;  %v4467_v6 = vmov 0.0  }
   0x4   :  { %4114 = vmatprep.subr.bf16.mxu0 %v4465_v3  ;;  %v4115_v4 = vpack.c.bf16 %v59_v1, %v58_v0  ;;  %v61_v5 = vld [vmem:[%s5146_s4 + $0x18] sm:$0xff]  ;;  %3821 = vmatprep.mubr.msk.f32.mxu0 %vm4466_vm0, %v4467_v6  ;;  %v62_v8 = vld [vmem:[%s5146_s4 + $0x20] sm:$0xff]  ;;  %v63_v9 = vld [vmem:[%s5146_s4 + $0x28] sm:$0xff]  ;;  %vm73_vm1 = vcmask 523264  }
   0x5   :  { %4126 = vmatprep.subr.bf16.mxu1 %v4465_v3  ;;  %3840 = vmatprep.mubr.msk.f32.mxu1 %vm4466_vm0, %v4467_v6  ;;  %v4118_v7 = vpack.c.bf16 %v61_v5, %v60_v2  ;;  %v4121_v10 = vpack.c.bf16 %v63_v9, %v62_v8  ;;  %v64_v11 = vld [vmem:[%s5146_s4 + $0x30] sm:$0xff]  ;;  %v65_v12 = vld [vmem:[%s5146_s4 + $0x38] sm:$0xff]  ;;  %v147_v13 = vld [vmem:[%s5149_s7] sm:$0xff]  ;;  %s5164_s4 = sld [smem:[#allocation6_spill]] }
   0x6   :  { %4116 = vmatpush3.bf16.msra.mxu0 %v4115_v4  ;;  %v148_v14 = vld [vmem:[%s5149_s7 + $0x8] sm:$0xff]  ;;  %v149_v16 = vld [vmem:[%s5149_s7 + $0x10] sm:$0xff]  ;;  %v150_v17 = vld [vmem:[%s5149_s7 + $0x18] sm:$0xff]  ;;  %v4124_v18 = vpack.c.bf16 %v65_v12, %v64_v11 }
   0x7   :  { %4117 = vmatprep.subr.bf16.mxu0 %v4465_v3  ;;  %v4127_v15 = vpack.c.bf16 %v148_v14, %v147_v13  ;;  %v259_v19 = vld [vmem:[%s5145_s3] sm:$0xff]  ;;  %v260_v20 = vld [vmem:[%s5145_s3 + $0x8] sm:$0xff]  ;;  %v4130_v21 = vpack.c.bf16 %v150_v17, %v149_v16  ;;  %v261_v26 = vld [vmem:[%s5145_s3 + $0x10] sm:$0xff] }
   0x8   :  { %v151_v22 = vld [vmem:[%s5149_s7 + $0x20] sm:$0xff]  ;;  %v152_v23 = vld [vmem:[%s5149_s7 + $0x28] sm:$0xff]  ;;  %v4139_v25 = vpack.c.bf16 %v260_v20, %v259_v19  ;;  %v262_v27 = vld [vmem:[%s5145_s3 + $0x18] sm:$0xff] }
   0x9   :  { %4128 = vmatpush3.bf16.msra.mxu1 %v4127_v15  ;;  %v57_v24 = vld [vmem:[%s5144_s2] sm:$0x3]  ;;  %v4133_v28 = vpack.c.bf16 %v152_v23, %v151_v22  ;;  %v153_v30 = vld [vmem:[%s5149_s7 + $0x30] sm:$0xff]  ;;  %v154_v31 = vld [vmem:[%s5149_s7 + $0x38] sm:$0xff] }
   0xa   :  { %4119 = vmatpush3.bf16.msra.mxu0 %v4118_v7  ;;  %4129 = vmatprep.subr.bf16.mxu1 %v4465_v3 }
   0xb   :  { %4120 = vmatprep.subr.bf16.mxu0 %v4465_v3  ;;  %v256_v29 = vld [vmem:[%s5164_s4 + $0x8] sm:$0xff] }
   0xd   :  { %4131 = vmatpush3.bf16.msra.mxu1 %v4130_v21 }
   0xe   :  { %4122 = vmatpush3.bf16.msra.mxu0 %v4121_v10  ;;  %4132 = vmatprep.subr.bf16.mxu1 %v4465_v3 }
   0xf   :  { %4123 = vmatprep.subr.bf16.mxu0 %v4465_v3 }
  0x12   :  { %4125 = vmatpush3.bf16.msra.mxu0 %v4124_v18 }
  0x13   :  { %4138 = vmatprep.subr.bf16.mxu0 %v4465_v3 }
  0x14   :  { %22 = vsyncpa [#allocation3], 0  ;;  %v368_v32 = vld [vmem:[%s5148_s6] sm:$0xff]  ;;  %v369_v33 = vld [vmem:[%s5148_s6 + $0x8] sm:$0x1]  ;;  %v4142_v34 = vpack.c.bf16 %v262_v27, %v261_v26  ;;  %vm377_vm2 = vcmask 1040384   ;;  %4134 = vmatpush3.bf16.msra.mxu1 %v4133_v28  ;;  %v4136_v37 = vpack.c.bf16 %v154_v31, %v153_v30 }
  0x15   :  { %3822 = vmatmul.mubr.msk.f32.vlgmr.msra.gmra.mrb[0].mxu0 %vm73_vm1, %v57_v24  ;;  %v263_v35 = vld [vmem:[%s5145_s3 + $0x20] sm:$0xff]  ;;  %v264_v36 = vld [vmem:[%s5145_s3 + $0x28] sm:$0xff]  ;;  %4135 = vmatprep.subr.bf16.mxu1 %v4465_v3  ;;  %v4174_v38 = vpack.c.bf16 %v369_v33, %v368_v32  ;;  %vm4468_vm3 = vmmov 1   ;;  %v265_v41 = vld [vmem:[%s5145_s3 + $0x30] sm:$0xff]  ;;  %s5167_s2 = sld [smem:[#allocation5_spill]]  ;;  %vm370_vm5 = vcmask 72704  }
  0x16   :  { %4140 = vmatpush1.bf16.msra.mxu0 %v4139_v25  ;;  %3595 = vmatprep.mubr.msk.f32.mxu0 %vm73_vm1, %v256_v29  ;;  %vm4659_vm4 = vmpackc.low %vm377_vm2, %vm4468_vm3  ;;  %v4145_v40 = vpack.c.bf16 %v264_v36, %v263_v35  ;;  %v266_v42 = vld [vmem:[%s5145_s3 + $0x38] sm:$0xff]  ;;  %v267_v45 = vld [vmem:[%s5145_s3 + $0x40] sm:$0xff]  ;;  %vm239_vm6 = vcmask 1041408   ;;  %vm241_vm7 = vcmask 1043456   ;;  %vm243_vm8 = vcmask 1045504   ;;  %s4469_s30 = smov 16  }
  0x17   :  { %4141 = vmatprep.subr.bf16.mxu0 %v4465_v3  ;;  %v4148_v44 = vpack.c.bf16 %v266_v42, %v265_v41  ;;  %v268_v46 = vld [vmem:[%s5145_s3 + $0x48] sm:$0xff]  ;;  %v269_v49 = vld [vmem:[%s5145_s3 + $0x50] sm:$0xff]  ;;  %v270_v50 = vld [vmem:[%s5145_s3 + $0x58] sm:$0xff]  ;;  %vm466_vm9 = vcmask 261120   ;;  %s4470_s18 = smov 32   ;;  %vm649_vm10 = vcmask 130048  }
  0x18   :  { %4137 = vmatpush3.bf16.msra.mxu1 %v4136_v37  ;;  %v4151_v48 = vpack.c.bf16 %v268_v46, %v267_v45  ;;  %v4154_v51 = vpack.c.bf16 %v270_v50, %v269_v49  ;;  %v271_v52 = vld [vmem:[%s5145_s3 + $0x60] sm:$0xff]  ;;  %v272_v53 = vld [vmem:[%s5145_s3 + $0x68] sm:$0xff]  ;;  %v273_v55 = vld [vmem:[%s5145_s3 + $0x70] sm:$0xff]  ;;  %s4474_s27 = smov [#allocation2]  }
  0x19   :  { %4176 = vmatprep.subr.msk.bf16.mxu1 %vm4659_vm4, %v4174_v38  ;;  %v4157_v54 = vpack.c.bf16 %v272_v53, %v271_v52  ;;  %v274_v56 = vld [vmem:[%s5145_s3 + $0x78] sm:$0xff]  ;;  %v275_v58 = vld [vmem:[%s5145_s3 + $0x80] sm:$0xff]  ;;  %v276_v59 = vld [vmem:[%s5145_s3 + $0x88] sm:$0xff]  ;;  %s3583_s6 = sshll.u32 %s4474_s27, 4  ;;  %s3584_s6 = int_to_ptr.vmem [resolvable:$true] %s3583_s6 }
  0x1a   :  { %4143 = vmatpush1.bf16.msra.mxu0 %v4142_v34  ;;  %v4160_v57 = vpack.c.bf16 %v274_v56, %v273_v55  ;;  %v4163_v60 = vpack.c.bf16 %v276_v59, %v275_v58  ;;  %v277_v61 = vld [vmem:[%s5145_s3 + $0x90] sm:$0xff]  ;;  %v278_v62 = vld [vmem:[%s5145_s3 + $0x98] sm:$0xff]  ;;  %v279_v0 = vld [vmem:[%s5145_s3 + $0xa0] sm:$0xff]  ;;  %p4446_p1 = scmp.lt.s32.totalorder %s3584_s6, %s3584_s6 }
  0x1b   :  { %4144 = vmatprep.subr.bf16.mxu0 %v4465_v3  ;;  %v366_v43 = vld [vmem:[%s5167_s2] sm:$0xff]  ;;  %3841 = vmatmul.mubr.msk.f32.vlgmr.msra.gmra.mrb[0].mxu1 %vm73_vm1, %v57_v24  ;;  %v367_v47 = vld [vmem:[%s5167_s2 + $0x8] sm:$0xff]  ;;  %v4166_v63 = vpack.c.bf16 %v278_v62, %v277_v61  ;;  %v281_v4 = vld [vmem:[%s5145_s3 + $0xb0] sm:$0xff]  ;;  %s4472_s2 = smov 48  }
  0x1c   :  { %4179 = vmatpush3.bf16.msk.msra.mxu1 %vm4659_vm4, %v4174_v38  ;;  %3847 = vmatprep.mubr.msk.f32.mxu1 %vm370_vm5, %v366_v43  ;;  %v280_v1 = vld [vmem:[%s5145_s3 + $0xa8] sm:$0xff]  ;;  %v282_v5 = vld [vmem:[%s5145_s3 + $0xb8] sm:$0xff]  ;;  %v255_v8 = vld [vmem:[%s5164_s4] sm:$0xff] }
  0x1d   :  { %v4169_v2 = vpack.c.bf16 %v280_v1, %v279_v0  ;;  %v4172_v7 = vpack.c.bf16 %v282_v5, %v281_v4  ;;  %v258_v9 = vld [vmem:[%s5164_s4 + $0x18] sm:$0xff]  ;;  %v257_v10 = vld [vmem:[%s5164_s4 + $0x10] sm:$0xff]  ;;  %v462_v11 = vld [vmem:[%s5152_s10] sm:$0xff] }
  0x1e   :  { %4146 = vmatpush1.bf16.msra.mxu0 %v4145_v40  ;;  %v463_v12 = vld [vmem:[%s5152_s10 + $0x8] sm:$0xff]  ;;  %v464_v14 = vld [vmem:[%s5152_s10 + $0x10] sm:$0xff]  ;;  %v465_v15 = vld [vmem:[%s5152_s10 + $0x18] sm:$0xff]  ;;  %s4473_s10 = smov 80  }
  0x1f   :  { %4147 = vmatprep.subr.bf16.mxu0 %v4465_v3  ;;  %3848 = vmatmul.mubr.msk.f32.vlgmr.msra.gmra.mrb[2].mxu1 %vm370_vm5, %v367_v47  ;;  %v4180_v13 = vpack.c.bf16 %v463_v12, %v462_v11  ;;  %v4184_v16 = vpack.c.bf16 %v465_v15, %v464_v14  ;;  %v458_v17 = vld [vmem:[%s5151_s9] sm:$0xff]  ;;  %v459_v18 = vld [vmem:[%s5151_s9 + $0x8] sm:$0xff]  ;;  %v460_v52 = vld [vmem:[%s5151_s9 + $0x10] sm:$0xff] }
  0x20   :  { %v4188_v19 = vpack.c.bf16 %v459_v18, %v458_v17  ;;  %v638_v20 = vld [vmem:[%s5154_s12] sm:$0xff]  ;;  %v639_v21 = vld [vmem:[%s5154_s12 + $0x8] sm:$0xff]  ;;  %v461_v53 = vld [vmem:[%s5151_s9 + $0x18] sm:$0xff] }
  0x21   :  { %4181 = vmatprep.subr.bf16.mxu1 %v4180_v13  ;;  %v4775_v22 = vpack.c.bf16 %v639_v21, %v638_v20  ;;  %v3593_v25 = vld [vmem:[%s5150_s8] ss:$0 sm:$0xff]  ;;  %v4192_v58 = vpack.c.bf16 %v461_v53, %v460_v52  ;;  %v3606_v61 = vld [vmem:[%s5154_s12 + $0x18] sm:$0xff]  ;;  %v3608_v0 = vld [vmem:[%s5154_s12 + $0x28] sm:$0xff] }
  0x22   :  { %4149 = vmatpush1.bf16.msra.mxu0 %v4148_v44  ;;  %4183 = vmatpush3.bf16.msra.mxu1 %v4180_v13  ;;  %v3591_v39 = vld [vmem:[%s5147_s5] ss:$0 sm:$0xff]  ;;  %v3610_v4 = vld [vmem:[%s5154_s12 + $0x38] sm:$0xff] }
  0x23   :  { %4150 = vmatprep.subr.bf16.mxu0 %v4465_v3  ;;  %4185 = vmatprep.subr.bf16.mxu1 %v4184_v16 }
  0x26   :  { %4152 = vmatpush1.bf16.msra.mxu0 %v4151_v48  ;;  %4187 = vmatpush3.bf16.msra.mxu1 %v4184_v16 }
  0x27   :  { %4153 = vmatprep.subr.bf16.mxu0 %v4465_v3  ;;  %4189 = vmatprep.subr.bf16.mxu1 %v4188_v19 }
  0x2a   :  { %4155 = vmatpush1.bf16.msra.mxu0 %v4154_v51 }
  0x2b   :  { %4156 = vmatprep.subr.bf16.mxu0 %v4465_v3 }
  0x2e   :  { %4158 = vmatpush1.bf16.msra.mxu0 %v4157_v54 }
  0x2f   :  { %4159 = vmatprep.subr.bf16.mxu0 %v4465_v3 }
  0x32   :  { %4161 = vmatpush1.bf16.msra.mxu0 %v4160_v57 }
  0x33   :  { %4162 = vmatprep.subr.bf16.mxu0 %v4465_v3 }
  0x36   :  { %4164 = vmatpush1.bf16.msra.mxu0 %v4163_v60  ;;  %v3605_v60 = vld [vmem:[%s5154_s12 + $0x10] sm:$0xff] }
  0x37   :  { %4165 = vmatprep.subr.bf16.mxu0 %v4465_v3  ;;  %v4805_v62 = vpack.c.bf16 %v3606_v61, %v3605_v60 }
  0x3a   :  { %4167 = vmatpush1.bf16.msra.mxu0 %v4166_v63  ;;  %v3607_v63 = vld [vmem:[%s5154_s12 + $0x20] sm:$0xff] }
  0x3b   :  { %4168 = vmatprep.subr.bf16.mxu0 %v4465_v3  ;;  %v4818_v1 = vpack.c.bf16 %v3608_v0, %v3607_v63 }
  0x3e   :  { %4170 = vmatpush1.bf16.msra.mxu0 %v4169_v2  ;;  %v3609_v2 = vld [vmem:[%s5154_s12 + $0x30] sm:$0xff] }
  0x3f   :  { %4171 = vmatprep.subr.bf16.mxu0 %v4465_v3  ;;  %v4831_v5 = vpack.c.bf16 %v3610_v4, %v3609_v2 }
  0x42   :  { %4173 = vmatpush1.bf16.msra.mxu0 %v4172_v7  ;;  %v3604_v7 = vld [vmem:[%s5153_s11] ss:$0 sm:$0xff]  ;;  %s4471_s11 = smov 96  }
  0x43   :  { %4220 = vmatprep.subr.bf16.mxu0 %v4465_v3 }
  0x45   :  { %354 = vmatmul.mubr.f32.vlgmr.msra.gmra.mrb[2].mxu0 %v255_v8 }
  0x46   :  { %3596 = vmatprep.mubr.msk.f32.mxu0 %vm73_vm1, %v258_v9  ;;  %4222 = vmatpush3.bf16.msra.mxu0 %v4775_v22 }
  0x47   :  { %4226 = vmatprep.subr.bf16.mxu0 %v4465_v3 }
  0x49   :  { %359 = vmatmul.mubr.f32.gmra.mrb[4].mxu0 %v257_v10 }
  0x4a   :  { %3932 = vmatprep.mubr.msk.f32.mxu0 %vm4466_vm0, %v4467_v6 }
  0xe8   :  { %v143_v23 = vpop.f32.mrb[0].mxu0 }
  0xe9   :  { %v3823_v24 = vpop.f32.mrb[1].mxu0  ;;  %v144_v40 = vadd.f32 %v3591_v39, %v143_v23 }
  0xeb   :  { %v233_v41 = vrot.slane %v144_v40, 6  ;;  %v235_v42 = vrot.slane %v144_v40, 4  ;;  %v237_v44 = vrot.slane %v144_v40, 2 }
  0xed   :  { %v240_v43 = vsel %vm239_vm6, %v144_v40, %v233_v41 }
  0xee   :  { %v228_v26 = vpop.f32.mrb[0].mxu1  ;;  %v242_v45 = vsel %vm241_vm7, %v240_v43, %v235_v42 }
  0xef   :  { %v229_v27 = vadd.f32 %v3593_v25, %v228_v26  ;;  %v3842_v28 = vpop.f32.mrb[1].mxu1  ;;  %v244_v46 = vsel %vm243_vm8, %v242_v45, %v237_v44 }
  0xf1   :  { %v246_v29 = vrot.slane %v229_v27, 6  ;;  %v248_v30 = vrot.slane %v229_v27, 4  ;;  %v250_v31 = vrot.slane %v229_v27, 2 }
  0xf2   :  { %v3849_v32 = vpop.f32.mrb[2].mxu1 }
  0xf3   :  { %v252_v33 = vsel %vm239_vm6, %v229_v27, %v246_v29  ;;  %v447_v34 = vpop.f32.mrb[3].mxu1 }
  0xf4   :  { %v253_v35 = vsel %vm241_vm7, %v252_v33, %v248_v30 }
  0xf5   :  { %v254_v36 = vsel %vm243_vm8, %v253_v35, %v250_v31 }
  0xf6   :  { %v453_v37 = vadd.f32 %v3849_v32, %v254_v36  ;;  %v448_v38 = vadd.f32 %v447_v34, %v254_v36 }
  0xf8   :  { %v456_v56 = vmax.f32 %v448_v38, 0.0  ;;  %v457_v59 = vmax.f32 %v453_v37, 0.0 }
 0x118   :  { %v355_v47 = vpop.f32.mrb[2].mxu0 }
 0x119   :  { %v356_v48 = vadd.f32 %v355_v47, %v244_v46  ;;  %v357_v49 = vpop.f32.mrb[3].mxu0 }
 0x11b   :  { %v364_v50 = vmax.f32 %v356_v48, 0.0 }
 0x11c   :  { %v360_v51 = vpop.f32.mrb[4].mxu0 }
 0x11d   :  { %v361_v54 = vadd.f32 %v360_v51, %v244_v46  ;;  %v362_v55 = vpop.f32.mrb[5].mxu0  ;;  %3858 = vmatprep.mubr.msk.f32.mxu1 %vm466_vm9, %v364_v50 }
 0x11f   :  { %v365_v57 = vmax.f32 %v361_v54, 0.0 }
 0x121   :  { %3859 = vmatmul.mubr.msk.f32.vlgmr.msra.gmra.mrb[4].mxu1 %vm466_vm9, %v365_v57 }
 0x122   :  { %4191 = vmatpush3.bf16.msra.mxu1 %v4188_v19  ;;  %3869 = vmatprep.mubr.msk.f32.mxu1 %vm466_vm9, %v456_v56 }
 0x123   :  { %4193 = vmatprep.subr.bf16.mxu1 %v4192_v58 }
 0x126   :  { %4195 = vmatpush3.bf16.msra.mxu1 %v4192_v58 }
 0x127   :  { %4196 = vmatprep.subr.bf16.mxu1 %v4465_v3 }
 0x129   :  { %3870 = vmatmul.mubr.msk.f32.vlgmr.msra.gmra.mrb[4].mxu1 %vm466_vm9, %v457_v59 }
 0x12a   :  { %4198 = vmatpush3.bf16.msra.mxu1 %v4775_v22  ;;  %3876 = vmatprep.mubr.msk.f32.mxu1 %vm4466_vm0, %v4467_v6 }
 0x12b   :  { %4199 = vmatprep.subr.bf16.mxu1 %v4465_v3 }
 0x12d   :  { %3877 = vmatmul.mubr.f32.vlgmr.msra.gmra.mrb[6].mxu1 %v4467_v6 }
 0x12e   :  { %4201 = vmatpush3.bf16.msra.mxu1 %v4805_v62  ;;  %3883 = vmatprep.mubr.msk.f32.mxu1 %vm4466_vm0, %v4467_v6 }
 0x12f   :  { %4202 = vmatprep.subr.bf16.mxu1 %v4465_v3 }
 0x131   :  { %3884 = vmatmul.mubr.f32.vlgmr.msra.gmra.mrb[8].mxu1 %v4467_v6 }
 0x132   :  { %4204 = vmatpush3.bf16.msra.mxu1 %v4818_v1  ;;  %3890 = vmatprep.mubr.msk.f32.mxu1 %vm4466_vm0, %v4467_v6 }
 0x133   :  { %4205 = vmatprep.subr.bf16.mxu1 %v4465_v3 }
 0x135   :  { %3891 = vmatmul.mubr.f32.vlgmr.msra.gmra.mrb[10].mxu1 %v4467_v6 }
 0x136   :  { %4207 = vmatpush3.bf16.msra.mxu1 %v4831_v5  ;;  %3897 = vmatprep.mubr.msk.f32.mxu1 %vm4466_vm0, %v4467_v6 }
 0x137   :  { %4208 = vmatprep.subr.bf16.mxu1 %v4465_v3 }
 0x139   :  { %3898 = vmatmul.mubr.f32.vlgmr.msra.gmra.mrb[12].mxu1 %v4467_v6 }
 0x13a   :  { %4210 = vmatpush3.bf16.msra.mxu1 %v4775_v22  ;;  %3904 = vmatprep.mubr.msk.f32.mxu1 %vm4466_vm0, %v4467_v6 }
 0x13b   :  { %4211 = vmatprep.subr.bf16.mxu1 %v4465_v3 }
 0x1fc   :  { %v3871_v8 = vpop.f32.mrb[4].mxu1 }
 0x1fd   :  { %v4847_v9 = vadd.f32 %v3871_v8, %v3604_v7  ;;  %v620_v10 = vpop.f32.mrb[5].mxu1 }
 0x1fe   :  { %v4851_v19 = vadd.f32 %v3604_v7, %v620_v10 }
 0x200   :  { %v719_v11 = vpop.f32.mrb[6].mxu1 }
 0x201   :  { %v3878_v12 = vpop.f32.mrb[7].mxu1  ;;  %v723_v24 = vadd.f32 %v719_v11, %v4851_v19 }
 0x203   :  { %v3611_v25 = vmul.f32 -1.442695, %v723_v24 }
 0x204   :  { %v796_v13 = vpop.f32.mrb[8].mxu1 }
 0x205   :  { %801 = vrot.lane.b32.xlu1 %v796_v13, %s4469_s30  ;;  %v3885_v14 = vpop.f32.mrb[9].mxu1 }
 0x208   :  { %v877_v15 = vpop.f32.mrb[10].mxu1 }
 0x209   :  { %882 = vrot.lane.b32.xlu0 %v877_v15, %s4470_s18  ;;  %v3892_v16 = vpop.f32.mrb[11].mxu1 }
 0x20c   :  { %v953_v17 = vpop.f32.mrb[12].mxu1 }
 0x20d   :  { %v3899_v18 = vpop.f32.mrb[13].mxu1 }
 0x277   :  { %v802_v31 = vpop.permute.xlu1 %801 }
 0x278   :  { %v804_v32 = vadd.f32 %v802_v31, %v4851_v19 }
 0x27a   :  { %v3612_v33 = vmul.f32 -1.442695, %v804_v32 }
 0x27b   :  { %v883_v20 = vpop.permute.xlu0 %882 }
 0x27c   :  { %v885_v21 = vadd.f32 %v883_v20, %v4851_v19 }
 0x27e   :  { %4313 = vtanh.f32 %v885_v21 }
 0x27f   :  { %4315 = vpow2.f32 %v3611_v25 }
 0x288   :  { %v4314_v23 = vpop.eup %4313 }
 0x289   :  { %970 = vrot.lane.b32.xlu0 %v4314_v23, %s4471_s11  ;;  %v4316_v26 = vpop.eup %4315 }
 0x28a   :  { %v727_v27 = vadd.f32 1.0, %v4316_v26 }
 0x28c   :  { %4317 = vrcp.f32 %v727_v27 }
 0x28d   :  { %958 = vrot.lane.b32.xlu0 %v953_v17, %s4472_s2  ;;  %4319 = vpow2.f32 %v3612_v33 }
 0x296   :  { %v4318_v28 = vpop.eup %4317 }
 0x297   :  { %v4320_v34 = vpop.eup %4319 }
 0x298   :  { %v808_v35 = vadd.f32 1.0, %v4320_v34 }
 0x29a   :  { %4321 = vrcp.f32 %v808_v35 }
 0x2a4   :  { %v4322_v36 = vpop.eup %4321 }
 0x2a5   :  { %v968_v37 = vmul.f32 0.0, %v4322_v36 }
 0x2fb   :  { %v971_v29 = vpop.permute.xlu0 %970 }
 0x2fc   :  { %v973_v30 = vmul.f32 %v4318_v28, %v971_v29 }
 0x2fe   :  { %975 = vrot.lane.b32.xlu1 %v973_v30, %s4469_s30 }
 0x2ff   :  { %v959_v41 = vpop.permute.xlu0 %958 }
 0x300   :  { %v961_v42 = vadd.f32 %v959_v41, %v4851_v19 }
 0x302   :  { %v3613_v43 = vmul.f32 -1.442695, %v961_v42 }
 0x370   :  { %v976_v38 = vpop.permute.xlu1 %975 }
 0x371   :  { %v4859_v39 = vadd.f32 %v976_v38, %v968_v37 }
 0x373   :  { %4323 = vtanh.f32 %v4859_v39  ;;  %v1312_v21 = vrot.slane %v4859_v39, 6 }
 0x374   :  { %4325 = vpow2.f32 %v3613_v43 }
 0x37d   :  { %v4324_v40 = vpop.eup %4323 }
 0x37e   :  { %981 = vrot.lane.b32.xlu1 %v4324_v40, %s4470_s18  ;;  %v4326_v44 = vpop.eup %4325 }
 0x37f   :  { %v965_v45 = vadd.f32 1.0, %v4326_v44 }
 0x381   :  { %4327 = vrcp.f32 %v965_v45 }
 0x38b   :  { %v4328_v46 = vpop.eup %4327 }
 0x3f0   :  { %v982_v47 = vpop.permute.xlu1 %981 }
 0x3f1   :  { %v984_v48 = vmul.f32 %v4328_v46, %v982_v47 }
 0x3f3   :  { %986 = vrot.lane.b32.xlu0 %v984_v48, %s4473_s10 }
 0x465   :  { %v987_v49 = vpop.permute.xlu0 %986 }
 0x466   :  { %3905 = vmatmul.mubr.msk.f32.vlgmr.msra.gmra.mrb[14].mxu1 %vm649_vm10, %v987_v49 }
 0x467   :  { %4213 = vmatpush3.bf16.msra.mxu1 %v4805_v62  ;;  %3911 = vmatprep.mubr.msk.f32.mxu1 %vm4466_vm0, %v4467_v6 }
 0x468   :  { %4214 = vmatprep.subr.bf16.mxu1 %v4465_v3 }
 0x46a   :  { %3912 = vmatmul.mubr.msk.f32.vlgmr.msra.gmra.mrb[16].mxu1 %vm649_vm10, %v987_v49 }
 0x46b   :  { %4216 = vmatpush3.bf16.msra.mxu1 %v4818_v1  ;;  %3918 = vmatprep.mubr.msk.f32.mxu1 %vm4466_vm0, %v4467_v6 }
 0x46c   :  { %4217 = vmatprep.subr.bf16.mxu1 %v4465_v3 }
 0x46e   :  { %3919 = vmatmul.mubr.msk.f32.vlgmr.msra.gmra.mrb[18].mxu1 %vm649_vm10, %v987_v49 }
 0x46f   :  { %4219 = vmatpush3.bf16.msra.mxu1 %v4831_v5  ;;  %3925 = vmatprep.mubr.msk.f32.mxu1 %vm4466_vm0, %v4467_v6 }
 0x470   :  { %4223 = vmatprep.subr.bf16.mxu1 %v4465_v3 }
 0x472   :  { %3926 = vmatmul.mubr.msk.f32.vlgmr.msra.gmra.mrb[20].mxu1 %vm649_vm10, %v987_v49 }
 0x473   :  { %4225 = vmatpush3.bf16.msra.mxu1 %v4805_v62  ;;  %3939 = vmatprep.mubr.msk.f32.mxu1 %vm4466_vm0, %v4467_v6 }
 0x474   :  { %4229 = vmatprep.subr.bf16.mxu1 %v4465_v3 }
 0x539   :  { %v1056_v50 = vpop.f32.mrb[14].mxu1 }
 0x53a   :  { %v3906_v51 = vpop.f32.mrb[15].mxu1  ;;  %v1061_v2 = vrot.slane %v1056_v50, 6 }
 0x53c   :  { %v1063_v4 = vadd.f32 %v1061_v2, %v4851_v19 }
 0x53d   :  { %v1136_v52 = vpop.f32.mrb[16].mxu1 }
 0x53e   :  { %v3913_v53 = vpop.f32.mrb[17].mxu1  ;;  %v1141_v58 = vrot.slane %v1136_v52, 6  ;;  %v3615_v7 = vmul.f32 -1.442695, %v1063_v4 }
 0x541   :  { %v1218_v54 = vpop.f32.mrb[18].mxu1 }
 0x542   :  { %v1223_v55 = vrot.slane %v1218_v54, 6  ;;  %v3920_v56 = vpop.f32.mrb[19].mxu1 }
 0x544   :  { %1224 = vrot.lane.b32.xlu1 %v1223_v55, %s4470_s18 }
 0x545   :  { %v1295_v57 = vpop.f32.mrb[20].mxu1 }
 0x546   :  { %v3927_v59 = vpop.f32.mrb[21].mxu1  ;;  %v1300_v60 = vrot.slane %v1295_v57, 6 }
 0x548   :  { %1142 = vrot.lane.b32.xlu1 %v1141_v58, %s4469_s30 }
 0x54c   :  { %1301 = vrot.lane.b32.xlu1 %v1300_v60, %s4472_s2 }
 0x5b6   :  { %v1225_v61 = vpop.permute.xlu1 %1224 }
 0x5b7   :  { %v1227_v63 = vadd.f32 %v1225_v61, %v4851_v19 }
 0x5b9   :  { %4329 = vtanh.f32 %v1227_v63 }
 0x5ba   :  { %4331 = vpow2.f32 %v3615_v7  ;;  %v1143_v14 = vpop.permute.xlu1 %1142 }
 0x5bb   :  { %v1145_v15 = vadd.f32 %v1143_v14, %v4851_v19 }
 0x5bd   :  { %v3617_v16 = vmul.f32 -1.442695, %v1145_v15 }
 0x5be   :  { %v1302_v27 = vpop.permute.xlu1 %1301 }
 0x5bf   :  { %v1304_v28 = vadd.f32 %v1302_v27, %v4851_v19 }
 0x5c1   :  { %v3620_v29 = vmul.f32 -1.442695, %v1304_v28 }
 0x5c3   :  { %v4330_v0 = vpop.eup %4329 }
 0x5c4   :  { %1316 = vrot.lane.b32.xlu0 %v4330_v0, %s4471_s11  ;;  %v4332_v8 = vpop.eup %4331 }
 0x5c5   :  { %v1067_v10 = vadd.f32 1.0, %v4332_v8 }
 0x5c7   :  { %4333 = vrcp.f32 %v1067_v10 }
 0x5c8   :  { %4335 = vpow2.f32 %v3617_v16 }
 0x5d1   :  { %v4334_v11 = vpop.eup %4333 }
 0x5d2   :  { %v4336_v17 = vpop.eup %4335 }
 0x5d3   :  { %v1149_v18 = vadd.f32 1.0, %v4336_v17 }
 0x5d5   :  { %4337 = vrcp.f32 %v1149_v18 }
 0x5df   :  { %v4338_v20 = vpop.eup %4337 }
 0x5e0   :  { %v1314_v23 = vmul.f32 %v4338_v20, %v1312_v21 }
 0x636   :  { %v1317_v12 = vpop.permute.xlu0 %1316 }
 0x637   :  { %v1319_v13 = vmul.f32 %v4334_v11, %v1317_v12 }
 0x639   :  { %1321 = vrot.lane.b32.xlu0 %v1319_v13, %s4469_s30 }
 0x6ab   :  { %v1322_v24 = vpop.permute.xlu0 %1321 }
 0x6ac   :  { %v4894_v25 = vadd.f32 %v1322_v24, %v1314_v23 }
 0x6ae   :  { %4339 = vtanh.f32 %v4894_v25  ;;  %v1659_v4 = vrot.slane %v4894_v25, 6 }
 0x6af   :  { %4341 = vpow2.f32 %v3620_v29 }
 0x6b8   :  { %v4340_v26 = vpop.eup %4339 }
 0x6b9   :  { %1327 = vrot.lane.b32.xlu0 %v4340_v26, %s4470_s18  ;;  %v4342_v30 = vpop.eup %4341 }
 0x6ba   :  { %v1308_v31 = vadd.f32 1.0, %v4342_v30 }
 0x6bc   :  { %4343 = vrcp.f32 %v1308_v31 }
 0x6c6   :  { %v4344_v32 = vpop.eup %4343 }
 0x72b   :  { %v1328_v33 = vpop.permute.xlu0 %1327 }
 0x72c   :  { %v1330_v34 = vmul.f32 %v4344_v32, %v1328_v33 }
 0x72e   :  { %v1332_v35 = vrot.slane %v1330_v34, 2 }
 0x730   :  { %1333 = vrot.lane.b32.xlu1 %v1332_v35, %s4473_s10 }
 0x7a2   :  { %v1334_v36 = vpop.permute.xlu1 %1333 }
 0x7a3   :  { %3933 = vmatmul.mubr.msk.f32.vlgmr.msra.gmra.mrb[6].mxu0 %vm649_vm10, %v1334_v36  ;;  %3940 = vmatmul.mubr.msk.f32.vlgmr.msra.gmra.mrb[22].mxu1 %vm649_vm10, %v1334_v36 }
 0x7a4   :  { %4228 = vmatpush3.bf16.msra.mxu0 %v4818_v1  ;;  %4231 = vmatpush3.bf16.msra.mxu1 %v4831_v5 }
 0x7a5   :  { %3946 = vmatprep.mubr.msk.f32.mxu0 %vm4466_vm0, %v4467_v6  ;;  %3953 = vmatprep.mubr.msk.f32.mxu1 %vm4466_vm0, %v4467_v6 }
 0x7a6   :  { %4232 = vmatprep.subr.bf16.mxu0 %v4465_v3  ;;  %4235 = vmatprep.subr.bf16.mxu1 %v4465_v3 }
 0x7a7   :  { %3947 = vmatmul.mubr.msk.f32.vlgmr.msra.gmra.mrb[8].mxu0 %vm649_vm10, %v1334_v36  ;;  %3954 = vmatmul.mubr.msk.f32.vlgmr.msra.gmra.mrb[24].mxu1 %vm649_vm10, %v1334_v36 }
 0x7a8   :  { %4234 = vmatpush3.bf16.msra.mxu0 %v4775_v22  ;;  %4237 = vmatpush3.bf16.msra.mxu1 %v4805_v62 }
 0x7a9   :  { %3960 = vmatprep.mubr.msk.f32.mxu0 %vm4466_vm0, %v4467_v6  ;;  %3967 = vmatprep.mubr.msk.f32.mxu1 %vm4466_vm0, %v4467_v6 }
 0x7aa   :  { %4238 = vmatprep.subr.bf16.mxu0 %v4465_v3  ;;  %4241 = vmatprep.subr.bf16.mxu1 %v4465_v3 }
 0x876   :  { %v1403_v37 = vpop.f32.mrb[6].mxu0  ;;  %v1483_v38 = vpop.f32.mrb[22].mxu1 }
 0x877   :  { %v3934_v39 = vpop.f32.mrb[7].mxu0  ;;  %v3941_v40 = vpop.f32.mrb[23].mxu1  ;;  %v1488_v46 = vrot.slane %v1483_v38, 4  ;;  %v1408_v51 = vrot.slane %v1403_v37, 4 }
 0x879   :  { %v1410_v52 = vadd.f32 %v1408_v51, %v4851_v19 }
 0x87a   :  { %v1565_v41 = vpop.f32.mrb[8].mxu0  ;;  %v1642_v42 = vpop.f32.mrb[24].mxu1 }
 0x87b   :  { %v1570_v43 = vrot.slane %v1565_v41, 4  ;;  %v3948_v44 = vpop.f32.mrb[9].mxu0  ;;  %v3955_v45 = vpop.f32.mrb[25].mxu1  ;;  %v1647_v47 = vrot.slane %v1642_v42, 4  ;;  %v3622_v53 = vmul.f32 -1.442695, %v1410_v52 }
 0x87d   :  { %1571 = vrot.lane.b32.xlu0 %v1570_v43, %s4470_s18 }
 0x881   :  { %1489 = vrot.lane.b32.xlu0 %v1488_v46, %s4469_s30 }
 0x885   :  { %1648 = vrot.lane.b32.xlu0 %v1647_v47, %s4472_s2 }
 0x8ef   :  { %v1572_v48 = vpop.permute.xlu0 %1571 }
 0x8f0   :  { %v1574_v49 = vadd.f32 %v1572_v48, %v4851_v19 }
 0x8f2   :  { %4345 = vtanh.f32 %v1574_v49 }
 0x8f3   :  { %4347 = vpow2.f32 %v3622_v53  ;;  %v1490_v59 = vpop.permute.xlu0 %1489 }
 0x8f4   :  { %v1492_v60 = vadd.f32 %v1490_v59, %v4851_v19 }
 0x8f6   :  { %v3624_v61 = vmul.f32 -1.442695, %v1492_v60 }
 0x8f7   :  { %v1649_v12 = vpop.permute.xlu0 %1648 }
 0x8f8   :  { %v1651_v13 = vadd.f32 %v1649_v12, %v4851_v19 }
 0x8fa   :  { %v3627_v14 = vmul.f32 -1.442695, %v1651_v13 }
 0x8fc   :  { %v4346_v50 = vpop.eup %4345 }
 0x8fd   :  { %1663 = vrot.lane.b32.xlu1 %v4346_v50, %s4471_s11  ;;  %v4348_v54 = vpop.eup %4347 }
 0x8fe   :  { %v1414_v55 = vadd.f32 1.0, %v4348_v54 }
 0x900   :  { %4349 = vrcp.f32 %v1414_v55 }
 0x901   :  { %4351 = vpow2.f32 %v3624_v61 }
 0x90a   :  { %v4350_v56 = vpop.eup %4349 }
 0x90b   :  { %v4352_v63 = vpop.eup %4351 }
 0x90c   :  { %v1496_v0 = vadd.f32 1.0, %v4352_v63 }
 0x90e   :  { %4353 = vrcp.f32 %v1496_v0 }
 0x918   :  { %v4354_v2 = vpop.eup %4353 }
 0x919   :  { %v1661_v7 = vmul.f32 %v4354_v2, %v1659_v4 }
 0x96f   :  { %v1664_v57 = vpop.permute.xlu1 %1663 }
 0x970   :  { %v1666_v58 = vmul.f32 %v4350_v56, %v1664_v57 }
 0x972   :  { %1668 = vrot.lane.b32.xlu1 %v1666_v58, %s4469_s30 }
 0x9e4   :  { %v1669_v8 = vpop.permute.xlu1 %1668 }
 0x9e5   :  { %v4929_v10 = vadd.f32 %v1669_v8, %v1661_v7 }
 0x9e7   :  { %4355 = vtanh.f32 %v4929_v10  ;;  %v2006_v52 = vrot.slane %v4929_v10, 6 }
 0x9e8   :  { %4357 = vpow2.f32 %v3627_v14 }
 0x9f1   :  { %v4356_v11 = vpop.eup %4355 }
 0x9f2   :  { %1674 = vrot.lane.b32.xlu1 %v4356_v11, %s4470_s18  ;;  %v4358_v15 = vpop.eup %4357 }
 0x9f3   :  { %v1655_v16 = vadd.f32 1.0, %v4358_v15 }
 0x9f5   :  { %4359 = vrcp.f32 %v1655_v16 }
 0x9ff   :  { %v4360_v17 = vpop.eup %4359 }
 0xa64   :  { %v1675_v18 = vpop.permute.xlu1 %1674 }
 0xa65   :  { %v1677_v20 = vmul.f32 %v4360_v17, %v1675_v18 }
 0xa67   :  { %v1679_v21 = vrot.slane %v1677_v20, 4 }
 0xa69   :  { %1680 = vrot.lane.b32.xlu0 %v1679_v21, %s4473_s10 }
 0xadb   :  { %v1681_v23 = vpop.permute.xlu0 %1680 }
 0xadc   :  { %3961 = vmatmul.mubr.msk.f32.vlgmr.msra.gmra.mrb[10].mxu0 %vm649_vm10, %v1681_v23  ;;  %3968 = vmatmul.mubr.msk.f32.vlgmr.msra.gmra.mrb[26].mxu1 %vm649_vm10, %v1681_v23 }
 0xadd   :  { %4240 = vmatpush3.bf16.msra.mxu0 %v4818_v1  ;;  %4243 = vmatpush3.bf16.msra.mxu1 %v4831_v5 }
 0xade   :  { %3974 = vmatprep.mubr.msk.f32.mxu0 %vm4466_vm0, %v4467_v6  ;;  %3981 = vmatprep.mubr.msk.f32.mxu1 %vm4466_vm0, %v4467_v6 }
 0xadf   :  { %4244 = vmatprep.subr.bf16.mxu0 %v4465_v3  ;;  %4247 = vmatprep.subr.bf16.mxu1 %v4465_v3 }
 0xae0   :  { %3975 = vmatmul.mubr.msk.f32.vlgmr.msra.gmra.mrb[12].mxu0 %vm649_vm10, %v1681_v23  ;;  %3982 = vmatmul.mubr.msk.f32.vlgmr.msra.gmra.mrb[28].mxu1 %vm649_vm10, %v1681_v23 }
 0xae1   :  { %4246 = vmatpush3.bf16.msra.mxu0 %v4775_v22  ;;  %4249 = vmatpush3.bf16.msra.mxu1 %v4805_v62 }
 0xae2   :  { %3988 = vmatprep.mubr.msk.f32.mxu0 %vm4466_vm0, %v4467_v6  ;;  %3995 = vmatprep.mubr.msk.f32.mxu1 %vm4466_vm0, %v4467_v6 }
 0xae3   :  { %4250 = vmatprep.subr.bf16.mxu0 %v4465_v3  ;;  %4253 = vmatprep.subr.bf16.mxu1 %v4465_v3 }
 0xbaf   :  { %v1750_v24 = vpop.f32.mrb[10].mxu0  ;;  %v1830_v25 = vpop.f32.mrb[26].mxu1 }
 0xbb0   :  { %v3962_v26 = vpop.f32.mrb[11].mxu0  ;;  %v3969_v27 = vpop.f32.mrb[27].mxu1  ;;  %v1835_v33 = vrot.slane %v1830_v25, 2  ;;  %v1755_v38 = vrot.slane %v1750_v24, 2 }
 0xbb2   :  { %v1757_v39 = vadd.f32 %v1755_v38, %v4851_v19 }
 0xbb3   :  { %v1912_v28 = vpop.f32.mrb[12].mxu0  ;;  %v1989_v29 = vpop.f32.mrb[28].mxu1 }
 0xbb4   :  { %v1917_v30 = vrot.slane %v1912_v28, 2  ;;  %v3976_v31 = vpop.f32.mrb[13].mxu0  ;;  %v3983_v32 = vpop.f32.mrb[29].mxu1  ;;  %v1994_v34 = vrot.slane %v1989_v29, 2  ;;  %v3629_v40 = vmul.f32 -1.442695, %v1757_v39 }
 0xbb6   :  { %1918 = vrot.lane.b32.xlu1 %v1917_v30, %s4470_s18 }
 0xbba   :  { %1836 = vrot.lane.b32.xlu1 %v1835_v33, %s4469_s30 }
 0xbbe   :  { %1995 = vrot.lane.b32.xlu1 %v1994_v34, %s4472_s2 }
 0xc28   :  { %v1919_v35 = vpop.permute.xlu1 %1918 }
 0xc29   :  { %v1921_v36 = vadd.f32 %v1919_v35, %v4851_v19 }
 0xc2b   :  { %4361 = vtanh.f32 %v1921_v36 }
 0xc2c   :  { %4363 = vpow2.f32 %v3629_v40  ;;  %v1837_v46 = vpop.permute.xlu1 %1836 }
 0xc2d   :  { %v1839_v47 = vadd.f32 %v1837_v46, %v4851_v19 }
 0xc2f   :  { %v3631_v48 = vmul.f32 -1.442695, %v1839_v47 }
 0xc30   :  { %v1996_v57 = vpop.permute.xlu1 %1995 }
 0xc31   :  { %v1998_v58 = vadd.f32 %v1996_v57, %v4851_v19 }
 0xc33   :  { %v3634_v59 = vmul.f32 -1.442695, %v1998_v58 }
 0xc35   :  { %v4362_v37 = vpop.eup %4361 }
 0xc36   :  { %2010 = vrot.lane.b32.xlu0 %v4362_v37, %s4471_s11  ;;  %v4364_v41 = vpop.eup %4363 }
 0xc37   :  { %v1761_v42 = vadd.f32 1.0, %v4364_v41 }
 0xc39   :  { %4365 = vrcp.f32 %v1761_v42 }
 0xc3a   :  { %4367 = vpow2.f32 %v3631_v48 }
 0xc43   :  { %v4366_v43 = vpop.eup %4365 }
 0xc44   :  { %v4368_v49 = vpop.eup %4367 }
 0xc45   :  { %v1843_v50 = vadd.f32 1.0, %v4368_v49 }
 0xc47   :  { %4369 = vrcp.f32 %v1843_v50 }
 0xc51   :  { %v4370_v51 = vpop.eup %4369 }
 0xc52   :  { %v2008_v53 = vmul.f32 %v4370_v51, %v2006_v52 }
 0xca8   :  { %v2011_v44 = vpop.permute.xlu0 %2010 }
 0xca9   :  { %v2013_v45 = vmul.f32 %v4366_v43, %v2011_v44 }
 0xcab   :  { %2015 = vrot.lane.b32.xlu0 %v2013_v45, %s4469_s30 }
 0xd1d   :  { %v2016_v54 = vpop.permute.xlu0 %2015 }
 0xd1e   :  { %v4964_v55 = vadd.f32 %v2016_v54, %v2008_v53 }
 0xd20   :  { %4371 = vtanh.f32 %v4964_v55  ;;  %v2347_v34 = vrot.slane %v4964_v55, 6 }
 0xd21   :  { %4373 = vpow2.f32 %v3634_v59 }
 0xd2a   :  { %v4372_v56 = vpop.eup %4371 }
 0xd2b   :  { %2021 = vrot.lane.b32.xlu0 %v4372_v56, %s4470_s18  ;;  %v4374_v60 = vpop.eup %4373 }
 0xd2c   :  { %v2002_v61 = vadd.f32 1.0, %v4374_v60 }
 0xd2e   :  { %4375 = vrcp.f32 %v2002_v61 }
 0xd38   :  { %v4376_v63 = vpop.eup %4375 }
 0xd9d   :  { %v2022_v0 = vpop.permute.xlu0 %2021 }
 0xd9e   :  { %v2024_v2 = vmul.f32 %v4376_v63, %v2022_v0 }
 0xda0   :  { %v2026_v4 = vrot.slane %v2024_v2, 6 }
 0xda2   :  { %2027 = vrot.lane.b32.xlu1 %v2026_v4, %s4473_s10 }
 0xe14   :  { %v2028_v7 = vpop.permute.xlu1 %2027 }
 0xe15   :  { %3989 = vmatmul.mubr.msk.f32.vlgmr.msra.gmra.mrb[14].mxu0 %vm649_vm10, %v2028_v7  ;;  %3996 = vmatmul.mubr.msk.f32.vlgmr.msra.gmra.mrb[30].mxu1 %vm649_vm10, %v2028_v7 }
 0xe16   :  { %4252 = vmatpush3.bf16.msra.mxu0 %v4818_v1  ;;  %4255 = vmatpush3.bf16.msra.mxu1 %v4831_v5 }
 0xe17   :  { %4002 = vmatprep.mubr.msk.f32.mxu0 %vm4466_vm0, %v4467_v6  ;;  %4009 = vmatprep.mubr.msk.f32.mxu1 %vm4466_vm0, %v4467_v6 }
 0xe18   :  { %4256 = vmatprep.subr.bf16.mxu0 %v4465_v3  ;;  %4259 = vmatprep.subr.bf16.mxu1 %v4465_v3 }
 0xe19   :  { %4003 = vmatmul.mubr.msk.f32.vlgmr.msra.gmra.mrb[16].mxu0 %vm649_vm10, %v2028_v7  ;;  %4010 = vmatmul.mubr.msk.f32.vlgmr.msra.gmra.mrb[32].mxu1 %vm649_vm10, %v2028_v7 }
 0xe1a   :  { %4258 = vmatpush3.bf16.msra.mxu0 %v4775_v22  ;;  %4261 = vmatpush3.bf16.msra.mxu1 %v4805_v62 }
 0xe1b   :  { %4016 = vmatprep.mubr.msk.f32.mxu0 %vm4466_vm0, %v4467_v6  ;;  %4023 = vmatprep.mubr.msk.f32.mxu1 %vm4466_vm0, %v4467_v6 }
 0xe1c   :  { %4262 = vmatprep.subr.bf16.mxu0 %v4465_v3  ;;  %4265 = vmatprep.subr.bf16.mxu1 %v4465_v3 }
 0xee8   :  { %v2097_v19 = vpop.f32.mrb[14].mxu0  ;;  %v2174_v8 = vpop.f32.mrb[30].mxu1 }
 0xee9   :  { %v3990_v10 = vpop.f32.mrb[15].mxu0  ;;  %v3997_v11 = vpop.f32.mrb[31].mxu1  ;;  %v2101_v20 = vadd.f32 %v2097_v19, %v4847_v9 }
 0xeeb   :  { %v3636_v21 = vmul.f32 -1.442695, %v2101_v20 }
 0xeec   :  { %v2255_v12 = vpop.f32.mrb[16].mxu0  ;;  %v2331_v13 = vpop.f32.mrb[32].mxu1 }
 0xeed   :  { %2260 = vrot.lane.b32.xlu0 %v2255_v12, %s4470_s18  ;;  %v4004_v14 = vpop.f32.mrb[17].mxu0  ;;  %v4011_v15 = vpop.f32.mrb[33].mxu1 }
 0xef1   :  { %2179 = vrot.lane.b32.xlu0 %v2174_v8, %s4469_s30 }
 0xef5   :  { %2336 = vrot.lane.b32.xlu0 %v2331_v13, %s4472_s2 }
 0xf5f   :  { %v2261_v16 = vpop.permute.xlu0 %2260 }
 0xf60   :  { %v2263_v17 = vadd.f32 %v2261_v16, %v4847_v9 }
 0xf62   :  { %4377 = vtanh.f32 %v2263_v17 }
 0xf63   :  { %4379 = vpow2.f32 %v3636_v21  ;;  %v2180_v28 = vpop.permute.xlu0 %2179 }
 0xf64   :  { %v2182_v29 = vadd.f32 %v2180_v28, %v4847_v9 }
 0xf66   :  { %v3638_v30 = vmul.f32 -1.442695, %v2182_v29 }
 0xf67   :  { %v2337_v39 = vpop.permute.xlu0 %2336 }
 0xf68   :  { %v2339_v40 = vadd.f32 %v2337_v39, %v4847_v9 }
 0xf6a   :  { %v3641_v41 = vmul.f32 -1.442695, %v2339_v40 }
 0xf6c   :  { %v4378_v18 = vpop.eup %4377 }
 0xf6d   :  { %2351 = vrot.lane.b32.xlu1 %v4378_v18, %s4471_s11  ;;  %v4380_v23 = vpop.eup %4379 }
 0xf6e   :  { %v2105_v24 = vadd.f32 1.0, %v4380_v23 }
 0xf70   :  { %4381 = vrcp.f32 %v2105_v24 }
 0xf71   :  { %4383 = vpow2.f32 %v3638_v30 }
 0xf7a   :  { %v4382_v25 = vpop.eup %4381 }
 0xf7b   :  { %v4384_v31 = vpop.eup %4383 }
 0xf7c   :  { %v2186_v32 = vadd.f32 1.0, %v4384_v31 }
 0xf7e   :  { %4385 = vrcp.f32 %v2186_v32 }
 0xf88   :  { %v4386_v33 = vpop.eup %4385 }
 0xf89   :  { %v2349_v35 = vmul.f32 %v4386_v33, %v2347_v34 }
 0xfdf   :  { %v2352_v26 = vpop.permute.xlu1 %2351 }
 0xfe0   :  { %v2354_v27 = vmul.f32 %v4382_v25, %v2352_v26 }
 0xfe2   :  { %2356 = vrot.lane.b32.xlu1 %v2354_v27, %s4469_s30 }
0x1054   :  { %v2357_v36 = vpop.permute.xlu1 %2356 }
0x1055   :  { %v4999_v37 = vadd.f32 %v2357_v36, %v2349_v35 }
0x1057   :  { %4387 = vtanh.f32 %v4999_v37  ;;  %v2693_v17 = vrot.slane %v4999_v37, 6 }
0x1058   :  { %4389 = vpow2.f32 %v3641_v41 }
0x1061   :  { %v4388_v38 = vpop.eup %4387 }
0x1062   :  { %2362 = vrot.lane.b32.xlu1 %v4388_v38, %s4470_s18  ;;  %v4390_v42 = vpop.eup %4389 }
0x1063   :  { %v2343_v43 = vadd.f32 1.0, %v4390_v42 }
0x1065   :  { %4391 = vrcp.f32 %v2343_v43 }
0x106f   :  { %v4392_v44 = vpop.eup %4391 }
0x10d4   :  { %v2363_v45 = vpop.permute.xlu1 %2362 }
0x10d5   :  { %v2365_v46 = vmul.f32 %v4392_v44, %v2363_v45 }
0x10d7   :  { %2367 = vrot.lane.b32.xlu0 %v2365_v46, %s4473_s10 }
0x1149   :  { %v2368_v47 = vpop.permute.xlu0 %2367 }
0x114a   :  { %4017 = vmatmul.mubr.msk.f32.vlgmr.msra.gmra.mrb[18].mxu0 %vm649_vm10, %v2368_v47  ;;  %4024 = vmatmul.mubr.msk.f32.vlgmr.msra.gmra.mrb[34].mxu1 %vm649_vm10, %v2368_v47 }
0x114b   :  { %4264 = vmatpush3.bf16.msra.mxu0 %v4818_v1  ;;  %4267 = vmatpush3.bf16.msra.mxu1 %v4831_v5 }
0x114c   :  { %4030 = vmatprep.mubr.msk.f32.mxu0 %vm4466_vm0, %v4467_v6  ;;  %4037 = vmatprep.mubr.msk.f32.mxu1 %vm4466_vm0, %v4467_v6 }
0x114d   :  { %4268 = vmatprep.subr.bf16.mxu0 %v4465_v3  ;;  %4271 = vmatprep.subr.bf16.mxu1 %v4465_v3 }
0x114e   :  { %4031 = vmatmul.mubr.msk.f32.vlgmr.msra.gmra.mrb[20].mxu0 %vm649_vm10, %v2368_v47  ;;  %4038 = vmatmul.mubr.msk.f32.vlgmr.msra.gmra.mrb[36].mxu1 %vm649_vm10, %v2368_v47 }
0x114f   :  { %4270 = vmatpush3.bf16.msra.mxu0 %v4775_v22  ;;  %4273 = vmatpush3.bf16.msra.mxu1 %v4805_v62 }
0x1150   :  { %4044 = vmatprep.mubr.msk.f32.mxu0 %vm4466_vm0, %v4467_v6  ;;  %4051 = vmatprep.mubr.msk.f32.mxu1 %vm4466_vm0, %v4467_v6 }
0x1151   :  { %4274 = vmatprep.subr.bf16.mxu0 %v4465_v3  ;;  %4277 = vmatprep.subr.bf16.mxu1 %v4465_v3 }
0x121d   :  { %v2437_v48 = vpop.f32.mrb[18].mxu0  ;;  %v2517_v49 = vpop.f32.mrb[34].mxu1 }
0x121e   :  { %v4018_v50 = vpop.f32.mrb[19].mxu0  ;;  %v4025_v51 = vpop.f32.mrb[35].mxu1  ;;  %v2522_v57 = vrot.slane %v2517_v49, 6  ;;  %v2442_v63 = vrot.slane %v2437_v48, 6 }
0x1220   :  { %v2444_v0 = vadd.f32 %v2442_v63, %v4847_v9 }
0x1221   :  { %v2599_v52 = vpop.f32.mrb[20].mxu0  ;;  %v2676_v53 = vpop.f32.mrb[36].mxu1 }
0x1222   :  { %v2604_v54 = vrot.slane %v2599_v52, 6  ;;  %v4032_v55 = vpop.f32.mrb[21].mxu0  ;;  %v4039_v56 = vpop.f32.mrb[37].mxu1  ;;  %v2681_v58 = vrot.slane %v2676_v53, 6  ;;  %v3643_v2 = vmul.f32 -1.442695, %v2444_v0 }
0x1224   :  { %2605 = vrot.lane.b32.xlu1 %v2604_v54, %s4470_s18 }
0x1228   :  { %2523 = vrot.lane.b32.xlu1 %v2522_v57, %s4469_s30 }
0x122c   :  { %2682 = vrot.lane.b32.xlu1 %v2681_v58, %s4472_s2 }
0x1296   :  { %v2606_v59 = vpop.permute.xlu1 %2605 }
0x1297   :  { %v2608_v60 = vadd.f32 %v2606_v59, %v4847_v9 }
0x1299   :  { %4393 = vtanh.f32 %v2608_v60 }
0x129a   :  { %4395 = vpow2.f32 %v3643_v2  ;;  %v2524_v11 = vpop.permute.xlu1 %2523 }
0x129b   :  { %v2526_v12 = vadd.f32 %v2524_v11, %v4847_v9 }
0x129d   :  { %v3645_v13 = vmul.f32 -1.442695, %v2526_v12 }
0x129e   :  { %v2683_v24 = vpop.permute.xlu1 %2682 }
0x129f   :  { %v2685_v25 = vadd.f32 %v2683_v24, %v4847_v9 }
0x12a1   :  { %v3648_v26 = vmul.f32 -1.442695, %v2685_v25 }
0x12a3   :  { %v4394_v61 = vpop.eup %4393 }
0x12a4   :  { %2697 = vrot.lane.b32.xlu0 %v4394_v61, %s4471_s11  ;;  %v4396_v4 = vpop.eup %4395 }
0x12a5   :  { %v2448_v7 = vadd.f32 1.0, %v4396_v4 }
0x12a7   :  { %4397 = vrcp.f32 %v2448_v7 }
0x12a8   :  { %4399 = vpow2.f32 %v3645_v13 }
0x12b1   :  { %v4398_v19 = vpop.eup %4397 }
0x12b2   :  { %v4400_v14 = vpop.eup %4399 }
0x12b3   :  { %v2530_v15 = vadd.f32 1.0, %v4400_v14 }
0x12b5   :  { %4401 = vrcp.f32 %v2530_v15 }
0x12bf   :  { %v4402_v16 = vpop.eup %4401 }
0x12c0   :  { %v2695_v18 = vmul.f32 %v4402_v16, %v2693_v17 }
0x1316   :  { %v2698_v8 = vpop.permute.xlu0 %2697 }
0x1317   :  { %v2700_v10 = vmul.f32 %v4398_v19, %v2698_v8 }
0x1319   :  { %2702 = vrot.lane.b32.xlu0 %v2700_v10, %s4469_s30 }
0x138b   :  { %v2703_v20 = vpop.permute.xlu0 %2702 }
0x138c   :  { %v5034_v21 = vadd.f32 %v2703_v20, %v2695_v18 }
0x138e   :  { %4403 = vtanh.f32 %v5034_v21  ;;  %v3040_v60 = vrot.slane %v5034_v21, 6 }
0x138f   :  { %4405 = vpow2.f32 %v3648_v26 }
0x1398   :  { %v4404_v23 = vpop.eup %4403 }
0x1399   :  { %2708 = vrot.lane.b32.xlu0 %v4404_v23, %s4470_s18  ;;  %v4406_v27 = vpop.eup %4405 }
0x139a   :  { %v2689_v28 = vadd.f32 1.0, %v4406_v27 }
0x139c   :  { %4407 = vrcp.f32 %v2689_v28 }
0x13a6   :  { %v4408_v29 = vpop.eup %4407 }
0x140b   :  { %v2709_v30 = vpop.permute.xlu0 %2708 }
0x140c   :  { %v2711_v31 = vmul.f32 %v4408_v29, %v2709_v30 }
0x140e   :  { %v2713_v32 = vrot.slane %v2711_v31, 2 }
0x1410   :  { %2714 = vrot.lane.b32.xlu1 %v2713_v32, %s4473_s10 }
0x1482   :  { %v2715_v33 = vpop.permute.xlu1 %2714 }
0x1483   :  { %4045 = vmatmul.mubr.msk.f32.vlgmr.msra.gmra.mrb[22].mxu0 %vm649_vm10, %v2715_v33  ;;  %4052 = vmatmul.mubr.msk.f32.vlgmr.msra.gmra.mrb[38].mxu1 %vm649_vm10, %v2715_v33 }
0x1484   :  { %4276 = vmatpush3.bf16.msra.mxu0 %v4818_v1  ;;  %4279 = vmatpush3.bf16.msra.mxu1 %v4831_v5 }
0x1485   :  { %4058 = vmatprep.mubr.msk.f32.mxu0 %vm4466_vm0, %v4467_v6  ;;  %4065 = vmatprep.mubr.msk.f32.mxu1 %vm4466_vm0, %v4467_v6 }
0x1486   :  { %4280 = vmatprep.subr.bf16.mxu0 %v4465_v3  ;;  %4283 = vmatprep.subr.bf16.mxu1 %v4465_v3 }
0x1487   :  { %4059 = vmatmul.mubr.msk.f32.vlgmr.msra.gmra.mrb[24].mxu0 %vm649_vm10, %v2715_v33  ;;  %4066 = vmatmul.mubr.msk.f32.vlgmr.msra.gmra.mrb[40].mxu1 %vm649_vm10, %v2715_v33 }
0x1488   :  { %4282 = vmatpush3.bf16.msra.mxu0 %v4775_v22  ;;  %4285 = vmatpush3.bf16.msra.mxu1 %v4805_v62 }
0x1489   :  { %4072 = vmatprep.mubr.msk.f32.mxu0 %vm4466_vm0, %v4467_v6  ;;  %4079 = vmatprep.mubr.msk.f32.mxu1 %vm4466_vm0, %v4467_v6 }
0x148a   :  { %4286 = vmatprep.subr.bf16.mxu0 %v4465_v3  ;;  %4289 = vmatprep.subr.bf16.mxu1 %v4465_v3 }
0x1556   :  { %v2784_v34 = vpop.f32.mrb[22].mxu0  ;;  %v2864_v35 = vpop.f32.mrb[38].mxu1 }
0x1557   :  { %v4046_v36 = vpop.f32.mrb[23].mxu0  ;;  %v4053_v37 = vpop.f32.mrb[39].mxu1  ;;  %v2869_v62 = vrot.slane %v2864_v35, 4  ;;  %v2789_v46 = vrot.slane %v2784_v34, 4 }
0x1559   :  { %v2791_v47 = vadd.f32 %v2789_v46, %v4847_v9  ;;  %v3407_v46 = vld [vmem:[%s5155_s13 + $0x8] sm:$0xff] }
0x155a   :  { %v2946_v38 = vpop.f32.mrb[24].mxu0  ;;  %v3023_v39 = vpop.f32.mrb[40].mxu1 }
0x155b   :  { %v2951_v40 = vrot.slane %v2946_v38, 4  ;;  %v4060_v22 = vpop.f32.mrb[25].mxu0  ;;  %v4067_v41 = vpop.f32.mrb[41].mxu1  ;;  %v3028_v42 = vrot.slane %v3023_v39, 4  ;;  %v3650_v48 = vmul.f32 -1.442695, %v2791_v47 }
0x155d   :  { %2952 = vrot.lane.b32.xlu0 %v2951_v40, %s4470_s18 }
0x1561   :  { %2870 = vrot.lane.b32.xlu0 %v2869_v62, %s4469_s30 }
0x1565   :  { %3029 = vrot.lane.b32.xlu0 %v3028_v42, %s4472_s2 }
0x15cf   :  { %v2953_v43 = vpop.permute.xlu0 %2952 }
0x15d0   :  { %v2955_v44 = vadd.f32 %v2953_v43, %v4847_v9 }
0x15d2   :  { %4409 = vtanh.f32 %v2955_v44 }
0x15d3   :  { %4411 = vpow2.f32 %v3650_v48  ;;  %v2871_v54 = vpop.permute.xlu0 %2870 }
0x15d4   :  { %v2873_v55 = vadd.f32 %v2871_v54, %v4847_v9  ;;  %v3492_v54 = vld [vmem:[%s5157_s15] sm:$0xff] }
0x15d6   :  { %v3652_v56 = vmul.f32 -1.442695, %v2873_v55  ;;  %v3493_v55 = vld [vmem:[%s5157_s15 + $0x8] sm:$0xff] }
0x15d7   :  { %v3030_v4 = vpop.permute.xlu0 %3029 }
0x15d8   :  { %v3032_v7 = vadd.f32 %v3030_v4, %v4847_v9 }
0x15da   :  { %v3655_v19 = vmul.f32 -1.442695, %v3032_v7 }
0x15dc   :  { %v4410_v45 = vpop.eup %4409 }
0x15dd   :  { %3044 = vrot.lane.b32.xlu1 %v4410_v45, %s4471_s11  ;;  %v4412_v49 = vpop.eup %4411  ;;  %v3406_v45 = vld [vmem:[%s5155_s13] sm:$0xff] }
0x15de   :  { %v2795_v50 = vadd.f32 1.0, %v4412_v49  ;;  %v4293_v47 = vpack.c.bf16 %v3407_v46, %v3406_v45 }
0x15e0   :  { %4413 = vrcp.f32 %v2795_v50 }
0x15e1   :  { %4415 = vpow2.f32 %v3652_v56  ;;  %v4296_v56 = vpack.c.bf16 %v3493_v55, %v3492_v54 }
0x15ea   :  { %v4414_v51 = vpop.eup %4413 }
0x15eb   :  { %v4416_v57 = vpop.eup %4415 }
0x15ec   :  { %v2877_v58 = vadd.f32 1.0, %v4416_v57 }
0x15ee   :  { %4417 = vrcp.f32 %v2877_v58 }
0x15f8   :  { %v4418_v59 = vpop.eup %4417 }
0x15f9   :  { %v3042_v61 = vmul.f32 %v4418_v59, %v3040_v60 }
0x164f   :  { %v3045_v52 = vpop.permute.xlu1 %3044 }
0x1650   :  { %v3047_v53 = vmul.f32 %v4414_v51, %v3045_v52 }
0x1652   :  { %3049 = vrot.lane.b32.xlu1 %v3047_v53, %s4469_s30 }
0x16c4   :  { %v3050_v63 = vpop.permute.xlu1 %3049 }
0x16c5   :  { %v5069_v0 = vadd.f32 %v3050_v63, %v3042_v61  ;;  %v3494_v61 = vld [vmem:[%s5157_s15 + $0x10] sm:$0xff]  ;;  %v3495_v63 = vld [vmem:[%s5157_s15 + $0x18] sm:$0xff]  ;;  %s4441_s15 = scalar_lea.vmem %s3584_s6, 32 }
0x16c6   :  { %p4442_p0 = scmp.ne.s32.totalorder %s3584_s6, %s4441_s15  ;;  %p4447_p2 = scmp.lt.s32.totalorder %s4441_s15, %s4441_s15 }
0x16c7   :  { %4419 = vtanh.f32 %v5069_v0  ;;  %v3387_v62 = vrot.slane %v5069_v0, 6  ;;  %v4299_v0 = vpack.c.bf16 %v3495_v63, %v3494_v61 }
0x16c8   :  { %4421 = vpow2.f32 %v3655_v19  ;;  %p4448_p3 = por %p4447_p2, %p4446_p1 }
0x16ca   :  { %p4449_p4 = pnand %p4448_p3, %p4442_p0 }
0x16d1   :  { %v4420_v2 = vpop.eup %4419 }
0x16d2   :  { %3055 = vrot.lane.b32.xlu1 %v4420_v2, %s4470_s18  ;;  %v4422_v8 = vpop.eup %4421 }
0x16d3   :  { %v3036_v10 = vadd.f32 1.0, %v4422_v8  ;;  %v3665_v8 = vld [vmem:[%s5158_s16] ss:$0 sm:$0xff] }
0x16d5   :  { %4423 = vrcp.f32 %v3036_v10 }
0x16df   :  { %v4424_v11 = vpop.eup %4423 }
0x1744   :  { %v3056_v12 = vpop.permute.xlu1 %3055 }
0x1745   :  { %v3058_v13 = vmul.f32 %v4424_v11, %v3056_v12 }
0x1747   :  { %v3060_v14 = vrot.slane %v3058_v13, 4 }
0x1749   :  { %3061 = vrot.lane.b32.xlu0 %v3060_v14, %s4473_s10 }
0x17bb   :  { %v3062_v15 = vpop.permute.xlu0 %3061 }
0x17bc   :  { %4073 = vmatmul.mubr.msk.f32.vlgmr.msra.gmra.mrb[26].mxu0 %vm649_vm10, %v3062_v15  ;;  %4080 = vmatmul.mubr.msk.f32.vlgmr.msra.gmra.mrb[42].mxu1 %vm649_vm10, %v3062_v15 }
0x17bd   :  { %4288 = vmatpush3.bf16.msra.mxu0 %v4818_v1  ;;  %4291 = vmatpush3.bf16.msra.mxu1 %v4831_v5 }
0x17be   :  { %4086 = vmatprep.mubr.msk.f32.mxu0 %vm4466_vm0, %v4467_v6  ;;  %4093 = vmatprep.mubr.msk.f32.mxu1 %vm4466_vm0, %v4467_v6 }
0x17bf   :  { %4292 = vmatprep.subr.bf16.mxu0 %v4465_v3  ;;  %4295 = vmatprep.subr.bf16.mxu1 %v4465_v3 }
0x17c0   :  { %4087 = vmatmul.mubr.msk.f32.vlgmr.msra.gmra.mrb[28].mxu0 %vm649_vm10, %v3062_v15  ;;  %4094 = vmatmul.mubr.msk.f32.vlgmr.msra.gmra.mrb[44].mxu1 %vm649_vm10, %v3062_v15 }
0x17c1   :  { %4100 = vmatprep.mubr.msk.f32.mxu0 %vm4466_vm0, %v4467_v6  ;;  %4111 = vmatprep.mubr.msk.f32.mxu1 %vm4466_vm0, %v4467_v6 }
0x17c2   :  { %4294 = vmatpush3.bf16.msra.mxu0 %v4293_v47  ;;  %4297 = vmatpush3.bf16.msra.mxu1 %v4296_v56 }
0x17c3   :  { %4298 = vmatprep.subr.bf16.mxu1 %v4465_v3  ;;  %v3663_v3 = vld [vmem:[%s5156_s14] ss:$0 sm:$0xff] }
0x17c6   :  { %4300 = vmatpush3.bf16.msra.mxu1 %v4299_v0 }
0x188f   :  { %v3131_v1 = vpop.f32.mrb[26].mxu0  ;;  %v3211_v5 = vpop.f32.mrb[42].mxu1 }
0x1890   :  { %v4074_v16 = vpop.f32.mrb[27].mxu0  ;;  %v4081_v17 = vpop.f32.mrb[43].mxu1  ;;  %v3216_v25 = vrot.slane %v3211_v5, 2  ;;  %v3136_v29 = vrot.slane %v3131_v1, 2 }
0x1892   :  { %v3138_v30 = vadd.f32 %v3136_v29, %v4847_v9 }
0x1893   :  { %v3293_v18 = vpop.f32.mrb[28].mxu0  ;;  %v3370_v20 = vpop.f32.mrb[44].mxu1 }
0x1894   :  { %v3298_v21 = vrot.slane %v3293_v18, 2  ;;  %v4088_v23 = vpop.f32.mrb[29].mxu0  ;;  %v4095_v24 = vpop.f32.mrb[45].mxu1  ;;  %v3375_v26 = vrot.slane %v3370_v20, 2  ;;  %v3657_v31 = vmul.f32 -1.442695, %v3138_v30 }
0x1896   :  { %3299 = vrot.lane.b32.xlu1 %v3298_v21, %s4470_s18 }
0x189a   :  { %3217 = vrot.lane.b32.xlu1 %v3216_v25, %s4469_s30 }
0x189e   :  { %3376 = vrot.lane.b32.xlu1 %v3375_v26, %s4472_s2 }
0x1908   :  { %v3300_v27 = vpop.permute.xlu1 %3299 }
0x1909   :  { %v3302_v6 = vadd.f32 %v3300_v27, %v4847_v9 }
0x190b   :  { %4425 = vtanh.f32 %v3302_v6 }
0x190c   :  { %4427 = vpow2.f32 %v3657_v31  ;;  %v3218_v37 = vpop.permute.xlu1 %3217 }
0x190d   :  { %v3220_v38 = vadd.f32 %v3218_v37, %v4847_v9 }
0x190f   :  { %v3659_v39 = vmul.f32 -1.442695, %v3220_v38 }
0x1910   :  { %v3377_v49 = vpop.permute.xlu1 %3376 }
0x1911   :  { %v3379_v50 = vadd.f32 %v3377_v49, %v4847_v9 }
0x1913   :  { %v3662_v51 = vmul.f32 -1.442695, %v3379_v50 }
0x1915   :  { %v4426_v28 = vpop.eup %4425 }
0x1916   :  { %3391 = vrot.lane.b32.xlu0 %v4426_v28, %s4471_s11  ;;  %v4428_v32 = vpop.eup %4427 }
0x1917   :  { %v3142_v33 = vadd.f32 1.0, %v4428_v32 }
0x1919   :  { %4429 = vrcp.f32 %v3142_v33 }
0x191a   :  { %4431 = vpow2.f32 %v3659_v39 }
0x1923   :  { %v4430_v34 = vpop.eup %4429 }
0x1924   :  { %v4432_v40 = vpop.eup %4431 }
0x1925   :  { %v3224_v22 = vadd.f32 1.0, %v4432_v40 }
0x1927   :  { %4433 = vrcp.f32 %v3224_v22 }
0x1931   :  { %v4434_v41 = vpop.eup %4433 }
0x1932   :  { %v3389_v42 = vmul.f32 %v4434_v41, %v3387_v62 }
0x1988   :  { %v3392_v35 = vpop.permute.xlu0 %3391 }
0x1989   :  { %v3394_v36 = vmul.f32 %v4430_v34, %v3392_v35 }
0x198b   :  { %3396 = vrot.lane.b32.xlu0 %v3394_v36, %s4469_s30 }
0x19fd   :  { %v3397_v43 = vpop.permute.xlu0 %3396 }
0x19fe   :  { %v3399_v44 = vadd.f32 %v3397_v43, %v3389_v42 }
0x1a00   :  { %4435 = vtanh.f32 %v3399_v44 }
0x1a01   :  { %4437 = vpow2.f32 %v3662_v51 }
0x1a0a   :  { %v4436_v48 = vpop.eup %4435 }
0x1a0b   :  { %3402 = vrot.lane.b32.xlu0 %v4436_v48, %s4470_s18  ;;  %v4438_v52 = vpop.eup %4437 }
0x1a0c   :  { %v3383_v53 = vadd.f32 1.0, %v4438_v52 }
0x1a0e   :  { %4439 = vrcp.f32 %v3383_v53 }
0x1a18   :  { %v4440_v57 = vpop.eup %4439 }
0x1a7d   :  { %v3403_v58 = vpop.permute.xlu0 %3402 }
0x1a7e   :  { %v3405_v9 = vmul.f32 %v4440_v57, %v3403_v58 }
0x1a80   :  { %v3416_v59 = vrot.slane %v3405_v9, 6 }
0x1a82   :  { %3417 = vrot.lane.b32.xlu1 %v3416_v59, %s4473_s10 }
0x1af4   :  { %v3418_v60 = vpop.permute.xlu1 %3417 }
0x1af5   :  { %4101 = vmatmul.mubr.msk.f32.vlgmr.msra.gmra.mrb[30].mxu0 %vm649_vm10, %v3418_v60 }
0x1bc8   :  { %v3487_v2 = vpop.f32.mrb[30].mxu0 }
0x1bc9   :  { %v3488_v4 = vadd.f32 %v3663_v3, %v3487_v2  ;;  %v4102_v7 = vpop.f32.mrb[31].mxu0 }
0x1bcb   :  { %v3491_v19 = vmax.f32 %v3488_v4, 0.0 }
0x1bcd   :  { %4112 = vmatmul.mubr.msk.f32.vlgmr.msra.gmra.mrb[46].mxu1 %vm466_vm9, %v3491_v19 }
0x1ca0   :  { %v3572_v10 = vpop.f32.mrb[46].mxu1 }
0x1ca1   :  { %v3573_v11 = vadd.f32 %v3665_v8, %v3572_v10  ;;  %v4113_v12 = vpop.f32.mrb[47].mxu1 }
0x1ca3   :  { %3576 = vst [vmem:[#allocation2] sm:$0x3] %v3573_v11 }
0x1ca4   :  { %4452 = shalt.err (!%p4449_p4)
}
0x1ca5   :  { %s4453_s29 = scalar_lea.hbm %s5159_s17, 32 }
0x1ca6   :  { %p4454_p5 = scmp.ne.s32.totalorder %s5159_s17, %s4453_s29  ;;  %p4457_p6 = scmp.lt.u32.totalorder %s4453_s29, %s5159_s17 }
0x1ca8   :  { %p4459_p7 = pnand %p4457_p6, %p4454_p5 }
0x1caa   :  { %4462 = shalt.err (!%p4459_p7)
}
0x1cab   :  { %3586 = dma.vmem_to_hbm [thread:$0]  %s3584_s6, 32, %s5159_s17, [#allocation3]  }
0x1cac   :  { %4463 = dma.done.wait [#allocation3], 32  }
0x1cad   :  { %4464 = vsyncadd [#allocation3], 4294967264 }
0x1cae   :  { %3590 = vsyncpa [#allocation3], 1 }

</bundles_post_ra>
